<compile_context>
chip_gen: v5e
topology: v5e:2x2
jax: 0.10.0
libtpu: 0.0.40
codegen_flags: <defaults>
</compile_context>

<pallas_src>
import math
import functools
import numpy as np
import jax
import jax.numpy as jnp
from jax.experimental import pallas as pl
from jax.experimental.pallas import tpu as pltpu


def _round_up(x, m):
    return (x + m - 1) // m * m


# ----------------------------- Pallas kernels ------------------------------ #

def _conv_stats_kernel(x_ref, w_ref, y_ref, sum_ref, sq_ref, patch_scr,
                       *, Kmax, H_out, W_out, C1, M, Mp):
    """Pass 1: fused multi-branch conv as ONE im2col matmul + per-tile
    per-channel partial BN statistics.

    Layout: channels on sublanes, flattened spatial on lanes, so the matmul
    output (C2p, Mp) and its store are lane-dense."""
    KK = Kmax * Kmax
    xp = x_ref[0]                                            # (C1, Hp, Wp) bf16 (pre-padded)

    # Keep lane-padding columns of the patch matrix zeroed so they contribute
    # nothing to the matmul / stats.  Only emitted when Mp > M.
    if Mp > M:
        patch_scr[:, M:] = jnp.zeros((KK * C1, Mp - M), patch_scr.dtype)

    # im2col: row = tap*C1 + ci, column = h*W_out + w.
    # TODO(synk): for Kmax >= 5 (49 taps) drive this fill with
    #             lax.fori_loop(..., unroll=True) or pltpu.roll-based shifts
    #             instead of a fully unrolled Python loop.
    for dh in range(Kmax):
        for dw in range(Kmax):
            tap = dh * Kmax + dw
            patch_scr[tap * C1:(tap + 1) * C1, :M] = (
                xp[:, dh:dh + H_out, dw:dw + W_out].reshape(C1, M))

    # Single big-K matmul: (C2p, KK*C1) x (KK*C1, Mp) -> f32 (C2p, Mp).
    acc = jnp.dot(w_ref[...], patch_scr[...],
                  preferred_element_type=jnp.float32)

    y_ref[0] = acc.astype(y_ref.dtype)                       # bf16, lane-dense

    # One-pass per-channel partial BN stats from the f32 accumulator
    # (lane-padding columns are exactly zero, so they do not affect sums).
    sum_ref[0] = jnp.sum(acc, axis=1, keepdims=True)         # (C2p, 1)
    sq_ref[0] = jnp.sum(acc * acc, axis=1, keepdims=True)    # (C2p, 1)


def _bn_act_kernel(y_ref, scale_ref, shift_ref, o_ref):
    """Pass 2: folded BatchNorm (one FMA with precomputed per-row scale/shift)
    + SiLU.  Operates on the flattened (rows=N*C2p, lanes=Mp) layout and writes
    the FULL lane-dense block; channel/lane padding is stripped in the wrapper."""
    z = y_ref[...].astype(jnp.float32) * scale_ref[...] + shift_ref[...]
    o_ref[...] = (z * jax.nn.sigmoid(z)).astype(o_ref.dtype)


# ------------------------------ module glue -------------------------------- #

class MixConv2dPallas:
    def __init__(self, c1, c2, k=(1, 3), s=1, equal_ch=True, eps=1e-5, seed=0):
        self.c1, self.c2, self.k, self.s, self.eps = c1, c2, tuple(k), s, float(eps)
        n = len(self.k)
        assert all(kj % 2 == 1 for kj in self.k), "odd kernel sizes expected"

        # channel split per branch (same math as the PyTorch module)
        if equal_ch:
            i = np.floor(np.linspace(0, n - 1e-6, c2))
            c_ = [int((i == g).sum()) for g in range(n)]
        else:
            b = [c2] + [0] * n
            a = np.eye(n + 1, n, k=-1)
            a -= np.roll(a, 1, axis=1)
            a *= np.array(self.k) ** 2
            a[0] = 1
            c_ = [int(v) for v in np.linalg.lstsq(a, b, rcond=None)[0].round()]
        self.c_ = c_

        key = jax.random.PRNGKey(seed)
        keys = jax.random.split(key, n + 2)

        # grouped conv weights, PyTorch layout (Cout, C1//g, k, k), bias=False
        self.groups = [math.gcd(c1, co) for co in c_]
        self.w_grouped = []
        dense_list = []                                      # (k, k, C1, cout) block-diag dense
        for j, (kj, co, g) in enumerate(zip(self.k, c_, self.groups)):
            cin_per = c1 // g
            bound = 1.0 / math.sqrt(cin_per * kj * kj)
            wg = jax.random.uniform(keys[j], (co, cin_per, kj, kj),
                                    jnp.float32, -bound, bound)
            self.w_grouped.append(wg)
            cout_per = co // g
            dense = np.zeros((kj, kj, c1, co), np.float32)
            wg_np = np.asarray(wg)
            for gi in range(g):
                blk = wg_np[gi * cout_per:(gi + 1) * cout_per]   # (cout_per, cin_per, k, k)
                blk = np.transpose(blk, (2, 3, 1, 0))            # (k, k, cin_per, cout_per)
                dense[:, :, gi * cin_per:(gi + 1) * cin_per,
                            gi * cout_per:(gi + 1) * cout_per] = blk
            dense_list.append(dense)

        # Fused per-tap weight (Kmax*Kmax, C2p, C1): smaller kernels fold into
        # the taps they cover (1x1 -> center tap).  Padded channels stay 0.
        Kmax = max(self.k)
        pad = Kmax // 2
        self.Kmax, self.pad = Kmax, pad
        self.c2p = _round_up(c2, 8)                           # sublane-friendly pad
        wf = np.zeros((Kmax * Kmax, self.c2p, c1), np.float32)
        ch_off = 0
        for kj, co, dense in zip(self.k, c_, dense_list):
            off = pad - kj // 2
            for i in range(kj):
                for jj in range(kj):
                    tap = (off + i) * Kmax + (off + jj)
                    wf[tap, ch_off:ch_off + co, :] = dense[i, jj].T   # (co, C1)
            ch_off += co
        # Reshape to the im2col layout (C2p, KK*C1) with row = tap*C1 + ci.
        w2d = np.transpose(wf, (1, 0, 2)).reshape(self.c2p, Kmax * Kmax * c1)
        self.w_fused2d = jnp.asarray(w2d, dtype=jnp.bfloat16)  # bf16 MXU feed

        # BatchNorm affine params (deterministic, non-trivial), padded to C2p.
        # (Padded channels: weight rows are 0 -> var 0, beta_p 0 -> output 0.)
        gamma = jax.random.uniform(keys[n], (c2,), jnp.float32, 0.5, 1.5)
        beta = 0.1 * jax.random.normal(keys[n + 1], (c2,), jnp.float32)
        self.gamma, self.beta = gamma, beta
        self.gamma_p = jnp.concatenate([gamma, jnp.ones((self.c2p - c2,), jnp.float32)])
        self.beta_p = jnp.concatenate([beta, jnp.zeros((self.c2p - c2,), jnp.float32)])

    def __call__(self, x_nchw):
        N, C1, H, W = x_nchw.shape
        assert C1 == self.c1
        assert self.s == 1, "stride>1 not supported"  # TODO(synk): DMA-side striding
        Kmax, pad = self.Kmax, self.pad
        H_out, W_out = H, W
        M = H_out * W_out
        Mp = _round_up(M, 128)                        # lane-dense flattened spatial
        Hp, Wp = H + 2 * pad, W + 2 * pad
        C2, C2p = self.c2, self.c2p
        KK = Kmax * Kmax

        # Wrapper-side pad + bf16 cast (fuses into one cheap XLA op; halves
        # pass-1 input DMA bytes and removes the in-kernel zero-fill/copy).
        x_pad = jnp.pad(x_nchw.astype(jnp.bfloat16),
                        ((0, 0), (0, 0), (pad, pad), (pad, pad)))

        # ----------------- pass 1: conv (im2col) + partial BN stats -------- #
        conv_kernel = functools.partial(
            _conv_stats_kernel, Kmax=Kmax, H_out=H_out, W_out=W_out,
            C1=C1, M=M, Mp=Mp)

        flops1 = 2 * N * C2p * Mp * KK * C1
        bytes1 = (N * C1 * Hp * Wp * 2 + C2p * KK * C1 * 2
                  + N * C2p * Mp * 2 + 2 * N * C2p * 4)
        y_conv, s_part, ss_part = pl.pallas_call(
            conv_kernel,
            grid=(N,),
            in_specs=[
                pl.BlockSpec((1, C1, Hp, Wp), lambda n: (n, 0, 0, 0)),
                pl.BlockSpec((C2p, KK * C1), lambda n: (0, 0)),
            ],
            out_specs=[
                pl.BlockSpec((1, C2p, Mp), lambda n: (n, 0, 0)),
                pl.BlockSpec((1, C2p, 1), lambda n: (n, 0, 0)),
                pl.BlockSpec((1, C2p, 1), lambda n: (n, 0, 0)),
            ],
            out_shape=[
                jax.ShapeDtypeStruct((N, C2p, Mp), jnp.bfloat16),
                jax.ShapeDtypeStruct((N, C2p, 1), jnp.float32),
                jax.ShapeDtypeStruct((N, C2p, 1), jnp.float32),
            ],
            scratch_shapes=[pltpu.VMEM((KK * C1, Mp), jnp.bfloat16)],
            compiler_params=pltpu.CompilerParams(
                dimension_semantics=("parallel",),
                vmem_limit_bytes=32 * 1024 * 1024),   # safe on v7x's 64 MiB too
            cost_estimate=pl.CostEstimate(
                flops=flops1, transcendentals=0, bytes_accessed=bytes1),
        )(x_pad, self.w_fused2d)

        # ------- tiny global reduction: fold BN into one scale/shift ------- #
        inv_NM = 1.0 / float(N * M)
        mean = jnp.sum(s_part, axis=0)[:, 0] * inv_NM                 # (C2p,)
        ex2 = jnp.sum(ss_part, axis=0)[:, 0] * inv_NM
        var = jnp.maximum(ex2 - mean * mean, 0.0)                     # biased var
        scale = self.gamma_p * jax.lax.rsqrt(var + self.eps)
        shift = self.beta_p - mean * scale

        # ------------------- pass 2: normalize + SiLU ---------------------- #
        # Flatten to 2D (N*C2p, Mp) and block whole images per step so each
        # grid step moves a large lane-dense slab (HBM-bound pass).
        R = N * C2p
        y2 = y_conv.reshape(R, Mp)
        scale_rows = jnp.broadcast_to(scale.reshape(1, C2p), (N, C2p)).reshape(R, 1)
        shift_rows = jnp.broadcast_to(shift.reshape(1, C2p), (N, C2p)).reshape(R, 1)

        b_img = 1
        for cand in range(N, 0, -1):
            # ~12 bytes/elem per step (bf16 in + f32 out, double-buffered)
            if N % cand == 0 and cand * C2p * Mp * 12 <= (16 << 20):
                b_img = cand
                break
        TR = b_img * C2p                                               # multiple of 8

        flops2 = 4 * R * Mp
        bytes2 = R * Mp * 2 + R * Mp * 4 + 2 * R * 4
        out2d = pl.pallas_call(
            _bn_act_kernel,
            grid=(R // TR,),
            in_specs=[
                pl.BlockSpec((TR, Mp), lambda r: (r, 0)),
                pl.BlockSpec((TR, 1), lambda r: (r, 0)),
                pl.BlockSpec((TR, 1), lambda r: (r, 0)),
            ],
            out_specs=pl.BlockSpec((TR, Mp), lambda r: (r, 0)),
            out_shape=jax.ShapeDtypeStruct((R, Mp), jnp.float32),
            compiler_params=pltpu.CompilerParams(
                dimension_semantics=("parallel",),
                vmem_limit_bytes=32 * 1024 * 1024),
            cost_estimate=pl.CostEstimate(
                flops=flops2, transcendentals=R * Mp, bytes_accessed=bytes2),
        )(y2, scale_rows, shift_rows)

        # Strip channel + lane padding in the wrapper (kernel stores stay full
        # lane-dense blocks); the final reshape/slice is cheap XLA.
        out = out2d.reshape(N, C2p, Mp)[:, :C2, :M]
        return out.reshape(N, C2, H_out, W_out)

    # pure-JAX reference (verification only)
    def reference(self, x_nchw):
        x = x_nchw.astype(jnp.float32)
        outs = []
        for wg, g, kj in zip(self.w_grouped, self.groups, self.k):
            p = kj // 2
            y = jax.lax.conv_general_dilated(
                x, wg, window_strides=(self.s, self.s),
                padding=[(p, p), (p, p)],
                dimension_numbers=('NCHW', 'OIHW', 'NCHW'),
                feature_group_count=g)
            outs.append(y)
        y = jnp.concatenate(outs, axis=1)
        mu = jnp.mean(y, axis=(0, 2, 3), keepdims=True)
        var = jnp.mean(jnp.square(y - mu), axis=(0, 2, 3), keepdims=True)
        y = (y - mu) / jnp.sqrt(var + self.eps)
        y = y * self.gamma.reshape(1, -1, 1, 1) + self.beta.reshape(1, -1, 1, 1)
        return y * jax.nn.sigmoid(y)


# --------------------------------- main ------------------------------------ #

if __name__ == "__main__":
    key = jax.random.PRNGKey(0)
    c1, c2 = 4, 6                      # branch split [3, 3], groups = gcd(4,3) = 1
    x = jax.random.normal(key, (2, c1, 16, 16), jnp.float32)   # NCHW like PyTorch

    mod = MixConv2dPallas(c1, c2, k=(1, 3), s=1, equal_ch=True, seed=0)
    fwd = jax.jit(mod.__call__)
    out = jax.block_until_ready(fwd(x))

    ref = jax.block_until_ready(mod.reference(x))
    # bf16 MXU feed + bf16 conv intermediate with f32 accumulation / f32 BN
    # fold -> slightly looser tolerance than pure-f32.
    np.testing.assert_allclose(np.asarray(out), np.asarray(ref), rtol=3e-2, atol=3e-2)

    print("KERNEL_OK")
</pallas_src>

<mosaic_0001>
module attributes {stable_mosaic.version = 11 : i64} {
  func.func @_conv_stats_kernel(%arg0: i32, %arg1: memref<1x4x18x18xbf16, #tpu.memory_space<vmem>>, %arg2: memref<8x36xbf16, #tpu.memory_space<vmem>>, %arg3: memref<1x8x256xbf16, #tpu.memory_space<vmem>>, %arg4: memref<1x8x1xf32, #tpu.memory_space<vmem>>, %arg5: memref<1x8x1xf32, #tpu.memory_space<vmem>>, %arg6: memref<36x256xbf16, #tpu.memory_space<vmem>>) attributes {dimension_semantics = [#tpu.dimension_semantics<parallel>], iteration_bounds = array<i64: 2>, scalar_prefetch = 0 : i64, scratch_operands = 1 : i64, tpu.core_type = #tpu.core_type<tc>, window_params = [{transform_indices = @transform_0, window_bounds = array<i64: 1, 4, 18, 18>}, {pipeline_mode = #tpu.pipeline_mode<synchronous>, transform_indices = @transform_1, window_bounds = array<i64: 8, 36>}, {transform_indices = @transform_2, window_bounds = array<i64: 1, 8, 256>}, {transform_indices = @transform_3, window_bounds = array<i64: 1, 8, 1>}, {transform_indices = @transform_4, window_bounds = array<i64: 1, 8, 1>}]} {
    %c0 = arith.constant 0 : index
    %c0_0 = arith.constant 0 : index
    %c0_1 = arith.constant 0 : index
    %c0_2 = arith.constant 0 : index
    %0 = vector.load %arg1[%c0, %c0_0, %c0_1, %c0_2] : memref<1x4x18x18xbf16, #tpu.memory_space<vmem>>, vector<1x4x18x18xbf16>
    %1 = vector.shape_cast %0 : vector<1x4x18x18xbf16> to vector<4x18x18xbf16>
    %2 = vector.extract_strided_slice %1 {offsets = [0, 0, 0], sizes = [4, 16, 16], strides = [1, 1, 1]} : vector<4x18x18xbf16> to vector<4x16x16xbf16>
    %3 = vector.shape_cast %2 : vector<4x16x16xbf16> to vector<4x256xbf16>
    %c0_3 = arith.constant 0 : index
    %c0_4 = arith.constant 0 : index
    %4 = vector.load %arg6[%c0_3, %c0_4] : memref<36x256xbf16, #tpu.memory_space<vmem>>, vector<4x256xbf16>
    tpu.vector_store %arg6[%c0_3, %c0_4], %3 {strides = array<i32>} : memref<36x256xbf16, #tpu.memory_space<vmem>>, vector<4x256xbf16>,
    %5 = vector.extract_strided_slice %1 {offsets = [0, 0, 1], sizes = [4, 16, 16], strides = [1, 1, 1]} : vector<4x18x18xbf16> to vector<4x16x16xbf16>
    %6 = vector.shape_cast %5 : vector<4x16x16xbf16> to vector<4x256xbf16>
    %c4 = arith.constant 4 : index
    %c0_5 = arith.constant 0 : index
    %7 = vector.load %arg6[%c4, %c0_5] : memref<36x256xbf16, #tpu.memory_space<vmem>>, vector<4x256xbf16>
    tpu.vector_store %arg6[%c4, %c0_5], %6 {strides = array<i32>} : memref<36x256xbf16, #tpu.memory_space<vmem>>, vector<4x256xbf16>,
    %8 = vector.extract_strided_slice %1 {offsets = [0, 0, 2], sizes = [4, 16, 16], strides = [1, 1, 1]} : vector<4x18x18xbf16> to vector<4x16x16xbf16>
    %9 = vector.shape_cast %8 : vector<4x16x16xbf16> to vector<4x256xbf16>
    %c8 = arith.constant 8 : index
    %c0_6 = arith.constant 0 : index
    %10 = vector.load %arg6[%c8, %c0_6] : memref<36x256xbf16, #tpu.memory_space<vmem>>, vector<4x256xbf16>
    tpu.vector_store %arg6[%c8, %c0_6], %9 {strides = array<i32>} : memref<36x256xbf16, #tpu.memory_space<vmem>>, vector<4x256xbf16>,
    %11 = vector.extract_strided_slice %1 {offsets = [0, 1, 0], sizes = [4, 16, 16], strides = [1, 1, 1]} : vector<4x18x18xbf16> to vector<4x16x16xbf16>
    %12 = vector.shape_cast %11 : vector<4x16x16xbf16> to vector<4x256xbf16>
    %c12 = arith.constant 12 : index
    %c0_7 = arith.constant 0 : index
    %13 = vector.load %arg6[%c12, %c0_7] : memref<36x256xbf16, #tpu.memory_space<vmem>>, vector<4x256xbf16>
    tpu.vector_store %arg6[%c12, %c0_7], %12 {strides = array<i32>} : memref<36x256xbf16, #tpu.memory_space<vmem>>, vector<4x256xbf16>,
    %14 = vector.extract_strided_slice %1 {offsets = [0, 1, 1], sizes = [4, 16, 16], strides = [1, 1, 1]} : vector<4x18x18xbf16> to vector<4x16x16xbf16>
    %15 = vector.shape_cast %14 : vector<4x16x16xbf16> to vector<4x256xbf16>
    %c16 = arith.constant 16 : index
    %c0_8 = arith.constant 0 : index
    %16 = vector.load %arg6[%c16, %c0_8] : memref<36x256xbf16, #tpu.memory_space<vmem>>, vector<4x256xbf16>
    tpu.vector_store %arg6[%c16, %c0_8], %15 {strides = array<i32>} : memref<36x256xbf16, #tpu.memory_space<vmem>>, vector<4x256xbf16>,
    %17 = vector.extract_strided_slice %1 {offsets = [0, 1, 2], sizes = [4, 16, 16], strides = [1, 1, 1]} : vector<4x18x18xbf16> to vector<4x16x16xbf16>
    %18 = vector.shape_cast %17 : vector<4x16x16xbf16> to vector<4x256xbf16>
    %c20 = arith.constant 20 : index
    %c0_9 = arith.constant 0 : index
    %19 = vector.load %arg6[%c20, %c0_9] : memref<36x256xbf16, #tpu.memory_space<vmem>>, vector<4x256xbf16>
    tpu.vector_store %arg6[%c20, %c0_9], %18 {strides = array<i32>} : memref<36x256xbf16, #tpu.memory_space<vmem>>, vector<4x256xbf16>,
    %20 = vector.extract_strided_slice %1 {offsets = [0, 2, 0], sizes = [4, 16, 16], strides = [1, 1, 1]} : vector<4x18x18xbf16> to vector<4x16x16xbf16>
    %21 = vector.shape_cast %20 : vector<4x16x16xbf16> to vector<4x256xbf16>
    %c24 = arith.constant 24 : index
    %c0_10 = arith.constant 0 : index
    %22 = vector.load %arg6[%c24, %c0_10] : memref<36x256xbf16, #tpu.memory_space<vmem>>, vector<4x256xbf16>
    tpu.vector_store %arg6[%c24, %c0_10], %21 {strides = array<i32>} : memref<36x256xbf16, #tpu.memory_space<vmem>>, vector<4x256xbf16>,
    %23 = vector.extract_strided_slice %1 {offsets = [0, 2, 1], sizes = [4, 16, 16], strides = [1, 1, 1]} : vector<4x18x18xbf16> to vector<4x16x16xbf16>
    %24 = vector.shape_cast %23 : vector<4x16x16xbf16> to vector<4x256xbf16>
    %c28 = arith.constant 28 : index
    %c0_11 = arith.constant 0 : index
    %25 = vector.load %arg6[%c28, %c0_11] : memref<36x256xbf16, #tpu.memory_space<vmem>>, vector<4x256xbf16>
    tpu.vector_store %arg6[%c28, %c0_11], %24 {strides = array<i32>} : memref<36x256xbf16, #tpu.memory_space<vmem>>, vector<4x256xbf16>,
    %26 = vector.extract_strided_slice %1 {offsets = [0, 2, 2], sizes = [4, 16, 16], strides = [1, 1, 1]} : vector<4x18x18xbf16> to vector<4x16x16xbf16>
    %27 = vector.shape_cast %26 : vector<4x16x16xbf16> to vector<4x256xbf16>
    %c32 = arith.constant 32 : index
    %c0_12 = arith.constant 0 : index
    %28 = vector.load %arg6[%c32, %c0_12] : memref<36x256xbf16, #tpu.memory_space<vmem>>, vector<4x256xbf16>
    tpu.vector_store %arg6[%c32, %c0_12], %27 {strides = array<i32>} : memref<36x256xbf16, #tpu.memory_space<vmem>>, vector<4x256xbf16>,
    %c0_13 = arith.constant 0 : index
    %c0_14 = arith.constant 0 : index
    %29 = vector.load %arg2[%c0_13, %c0_14] : memref<8x36xbf16, #tpu.memory_space<vmem>>, vector<8x36xbf16>
    %c0_15 = arith.constant 0 : index
    %c0_16 = arith.constant 0 : index
    %30 = vector.load %arg6[%c0_15, %c0_16] : memref<36x256xbf16, #tpu.memory_space<vmem>>, vector<36x256xbf16>
    %cst = arith.constant dense<0.000000e+00> : vector<8x256xf32>
    %31 = tpu.matmul %29, %30, %cst {dimension_numbers = #tpu.dot_dimension_numbers<[1], [0], [0], [1], [0, 0, 1, 1], [], []>} : vector<8x36xbf16>, vector<36x256xbf16>, vector<8x256xf32> -> vector<8x256xf32>
    %32 = arith.truncf %31 : vector<8x256xf32> to vector<8x256xbf16>
    %c0_17 = arith.constant 0 : index
    %c0_18 = arith.constant 0 : index
    %c0_19 = arith.constant 0 : index
    %33 = vector.load %arg3[%c0_17, %c0_18, %c0_19] : memref<1x8x256xbf16, #tpu.memory_space<vmem>>, vector<1x8x256xbf16>
    %34 = vector.shape_cast %33 : vector<1x8x256xbf16> to vector<8x256xbf16>
    %35 = vector.shape_cast %32 : vector<8x256xbf16> to vector<1x8x256xbf16>
    tpu.vector_store %arg3[%c0_17, %c0_18, %c0_19], %35 {strides = array<i32>} : memref<1x8x256xbf16, #tpu.memory_space<vmem>>, vector<1x8x256xbf16>,
    %cst_20 = arith.constant dense<0.000000e+00> : vector<8xf32>
    %36 = vector.multi_reduction <add>, %31, %cst_20 [1] : vector<8x256xf32> to vector<8xf32>
    %37 = vector.shape_cast %36 : vector<8xf32> to vector<8x1xf32>
    %c0_21 = arith.constant 0 : index
    %c0_22 = arith.constant 0 : index
    %c0_23 = arith.constant 0 : index
    %38 = vector.load %arg4[%c0_21, %c0_22, %c0_23] : memref<1x8x1xf32, #tpu.memory_space<vmem>>, vector<1x8x1xf32>
    %39 = vector.shape_cast %38 : vector<1x8x1xf32> to vector<8x1xf32>
    %40 = vector.shape_cast %37 : vector<8x1xf32> to vector<1x8x1xf32>
    tpu.vector_store %arg4[%c0_21, %c0_22, %c0_23], %40 {strides = array<i32>} : memref<1x8x1xf32, #tpu.memory_space<vmem>>, vector<1x8x1xf32>,
    %41 = arith.mulf %31, %31 : vector<8x256xf32>
    %cst_24 = arith.constant dense<0.000000e+00> : vector<8xf32>
    %42 = vector.multi_reduction <add>, %41, %cst_24 [1] : vector<8x256xf32> to vector<8xf32>
    %43 = vector.shape_cast %42 : vector<8xf32> to vector<8x1xf32>
    %c0_25 = arith.constant 0 : index
    %c0_26 = arith.constant 0 : index
    %c0_27 = arith.constant 0 : index
    %44 = vector.load %arg5[%c0_25, %c0_26, %c0_27] : memref<1x8x1xf32, #tpu.memory_space<vmem>>, vector<1x8x1xf32>
    %45 = vector.shape_cast %44 : vector<1x8x1xf32> to vector<8x1xf32>
    %46 = vector.shape_cast %43 : vector<8x1xf32> to vector<1x8x1xf32>
    tpu.vector_store %arg5[%c0_25, %c0_26, %c0_27], %46 {strides = array<i32>} : memref<1x8x1xf32, #tpu.memory_space<vmem>>, vector<1x8x1xf32>,
    return
  }
  func.func @transform_0(%arg0: i32) -> (i32, i32, i32, i32) {
    %c0_i32 = arith.constant 0 : i32
    %c0_i32_0 = arith.constant 0 : i32
    %c0_i32_1 = arith.constant 0 : i32
    %c0_i32_2 = arith.constant 0 : i32
    return %arg0, %c0_i32, %c0_i32_0, %c0_i32_1 : i32, i32, i32, i32
  }
  func.func @transform_1(%arg0: i32) -> (i32, i32) {
    %c0_i32 = arith.constant 0 : i32
    %c0_i32_0 = arith.constant 0 : i32
    %c0_i32_1 = arith.constant 0 : i32
    return %c0_i32, %c0_i32_0 : i32, i32
  }
  func.func @transform_2(%arg0: i32) -> (i32, i32, i32) {
    %c0_i32 = arith.constant 0 : i32
    %c0_i32_0 = arith.constant 0 : i32
    %c0_i32_1 = arith.constant 0 : i32
    return %arg0, %c0_i32, %c0_i32_0 : i32, i32, i32
  }
  func.func @transform_3(%arg0: i32) -> (i32, i32, i32) {
    %c0_i32 = arith.constant 0 : i32
    %c0_i32_0 = arith.constant 0 : i32
    %c0_i32_1 = arith.constant 0 : i32
    return %arg0, %c0_i32, %c0_i32_0 : i32, i32, i32
  }
  func.func @transform_4(%arg0: i32) -> (i32, i32, i32) {
    %c0_i32 = arith.constant 0 : i32
    %c0_i32_0 = arith.constant 0 : i32
    %c0_i32_1 = arith.constant 0 : i32
    return %arg0, %c0_i32, %c0_i32_0 : i32, i32, i32
  }
}

module attributes {stable_mosaic.version = 11 : i64} {
  func.func @_bn_act_kernel(%arg0: i32, %arg1: memref<16x256xbf16, #tpu.memory_space<vmem>>, %arg2: memref<16x1xf32, #tpu.memory_space<vmem>>, %arg3: memref<16x1xf32, #tpu.memory_space<vmem>>, %arg4: memref<16x256xf32, #tpu.memory_space<vmem>>) attributes {dimension_semantics = [#tpu.dimension_semantics<parallel>], iteration_bounds = array<i64: 1>, scalar_prefetch = 0 : i64, scratch_operands = 0 : i64, tpu.core_type = #tpu.core_type<tc>, window_params = [{transform_indices = @transform_0, window_bounds = array<i64: 16, 256>}, {transform_indices = @transform_1, window_bounds = array<i64: 16, 1>}, {transform_indices = @transform_2, window_bounds = array<i64: 16, 1>}, {transform_indices = @transform_3, window_bounds = array<i64: 16, 256>}]} {
    %c0 = arith.constant 0 : index
    %c0_0 = arith.constant 0 : index
    %0 = vector.load %arg1[%c0, %c0_0] : memref<16x256xbf16, #tpu.memory_space<vmem>>, vector<16x256xbf16>
    %1 = arith.extf %0 : vector<16x256xbf16> to vector<16x256xf32>
    %c0_1 = arith.constant 0 : index
    %c0_2 = arith.constant 0 : index
    %2 = vector.load %arg2[%c0_1, %c0_2] : memref<16x1xf32, #tpu.memory_space<vmem>>, vector<16x1xf32>
    %3 = vector.broadcast %2 : vector<16x1xf32> to vector<16x256xf32>
    %4 = arith.mulf %1, %3 : vector<16x256xf32>
    %c0_3 = arith.constant 0 : index
    %c0_4 = arith.constant 0 : index
    %5 = vector.load %arg3[%c0_3, %c0_4] : memref<16x1xf32, #tpu.memory_space<vmem>>, vector<16x1xf32>
    %6 = vector.broadcast %5 : vector<16x1xf32> to vector<16x256xf32>
    %7 = arith.addf %4, %6 : vector<16x256xf32>
    %8 = arith.negf %7 : vector<16x256xf32>
    %9 = math.exp %8 : vector<16x256xf32>
    %cst = arith.constant 1.000000e+00 : f32
    %10 = vector.broadcast %cst : f32 to vector<16x256xf32>
    %11 = arith.addf %10, %9 : vector<16x256xf32>
    %12 = arith.divf %10, %11 : vector<16x256xf32>
    %13 = arith.mulf %7, %12 : vector<16x256xf32>
    %c0_5 = arith.constant 0 : index
    %c0_6 = arith.constant 0 : index
    %14 = vector.load %arg4[%c0_5, %c0_6] : memref<16x256xf32, #tpu.memory_space<vmem>>, vector<16x256xf32>
    tpu.vector_store %arg4[%c0_5, %c0_6], %13 {strides = array<i32>} : memref<16x256xf32, #tpu.memory_space<vmem>>, vector<16x256xf32>,
    return
  }
  func.func @transform_0(%arg0: i32) -> (i32, i32) {
    %c0_i32 = arith.constant 0 : i32
    %c0_i32_0 = arith.constant 0 : i32
    return %arg0, %c0_i32 : i32, i32
  }
  func.func @transform_1(%arg0: i32) -> (i32, i32) {
    %c0_i32 = arith.constant 0 : i32
    %c0_i32_0 = arith.constant 0 : i32
    return %arg0, %c0_i32 : i32, i32
  }
  func.func @transform_2(%arg0: i32) -> (i32, i32) {
    %c0_i32 = arith.constant 0 : i32
    %c0_i32_0 = arith.constant 0 : i32
    return %arg0, %c0_i32 : i32, i32
  }
  func.func @transform_3(%arg0: i32) -> (i32, i32) {
    %c0_i32 = arith.constant 0 : i32
    %c0_i32_0 = arith.constant 0 : i32
    return %arg0, %c0_i32 : i32, i32
  }
}

</mosaic_0001>

<bundles_post_ra>
// kernel: a_call__.3
= control target key start
LH: loop header
LB: loop body
LE: loop exit
PB: predicated region body
PF: predicated region fallthrough
CT: control target
= control target key end

     0   :  { %v163_v0 = vmov 0   ;;  %s230_s2 = inlined_call_operand.vmem [shape: f32[16,1], index: 2, kind: input, shape index: {}]   ;;  %s231_s1 = inlined_call_operand.vmem [shape: f32[16,1], index: 1, kind: input, shape index: {}]   ;;  %s232_s0 = inlined_call_operand.vmem [shape: bf16[16,256], index: 0, kind: input, shape index: {}]   ;;  %s233_s3 = inlined_call_operand.vmem [shape: f32[16,256], index: 3, kind: output, shape index: {}]  }
   0x1   :  { %146 = vset.pattern.permute.xlu1 %v163_v0  ;;  %145 = vset.pattern.permute.xlu0 %v163_v0  ;;  %v36_v1 = vld [vmem:[%s230_s2] sm:$0xff]  ;;  %v37_v3 = vld [vmem:[%s230_s2 + $0x8] sm:$0xff] }
   0x2   :  { %v20_v2 = vld [vmem:[%s231_s1] sm:$0xff]  ;;  %40 = vperm.xlu1 %146, %v36_v1   ;;  %v21_v4 = vld [vmem:[%s231_s1 + $0x8] sm:$0xff] }
   0x3   :  { %24 = vperm.xlu0 %145, %v20_v2   ;;  %v14_v5 = vld [vmem:[%s232_s0] sm:$0xff]  ;;  %v15_v12 = vld [vmem:[%s232_s0 + $0x8] sm:$0xff] }
   0x4   :  { %v16_v6 = vunpack.c.l.bf16 %v14_v5  ;;  %v17_v7 = vunpack.c.h.bf16 %v14_v5  ;;  %v18_v17 = vunpack.c.l.bf16 %v15_v12  ;;  %v19_v18 = vunpack.c.h.bf16 %v15_v12 }
   0xa   :  { %45 = vperm.xlu1 %146, %v37_v3  }
   0xb   :  { %29 = vperm.xlu0 %145, %v21_v4  }
  0x74   :  { %v41_v8 = vpop.permute.xlu1 %40 }
  0x75   :  { %v25_v9 = vpop.permute.xlu0 %24 }
  0x76   :  { %v32_v10 = vmul.f32 %v25_v9, %v16_v6  ;;  %v33_v11 = vmul.f32 %v25_v9, %v17_v7 }
  0x78   :  { %v202_v13 = vadd.f32 %v41_v8, %v32_v10  ;;  %v204_v14 = vadd.f32 %v41_v8, %v33_v11 }
  0x7a   :  { %v140_v15 = vmul.f32 -1.442695, %v202_v13  ;;  %v141_v16 = vmul.f32 -1.442695, %v204_v14 }
  0x7c   :  { %147 = vpow2.f32 %v140_v15  ;;  %v46_v22 = vpop.permute.xlu1 %45 }
  0x7d   :  { %149 = vpow2.f32 %v141_v16  ;;  %v30_v19 = vpop.permute.xlu0 %29 }
  0x7e   :  { %v34_v20 = vmul.f32 %v30_v19, %v18_v17  ;;  %v35_v21 = vmul.f32 %v30_v19, %v19_v18 }
  0x80   :  { %v208_v23 = vadd.f32 %v46_v22, %v34_v20  ;;  %v210_v24 = vadd.f32 %v46_v22, %v35_v21 }
  0x82   :  { %v148_v25 = vpop.eup %147  ;;  %v142_v26 = vmul.f32 -1.442695, %v208_v23  ;;  %v143_v29 = vmul.f32 -1.442695, %v210_v24 }
  0x83   :  { %v150_v27 = vpop.eup %149  ;;  %v64_v28 = vadd.f32 1.0, %v148_v25 }
  0x84   :  { %v65_v30 = vadd.f32 1.0, %v150_v27  ;;  %151 = vpow2.f32 %v142_v26 }
  0x85   :  { %153 = vrcp.f32 %v64_v28  ;;  %v77_v40 = vand.u32 2147483647, %v64_v28  ;;  %v79_v41 = vand.u32 2147483648, %v64_v28  ;;  %vm73_vm2 = vweird.f32 %v64_v28 }
  0x86   :  { %155 = vrcp.f32 %v65_v30  ;;  %v94_v44 = vand.u32 2147483648, %v65_v30  ;;  %v92_v46 = vand.u32 2147483647, %v65_v30  ;;  %vm88_vm4 = vweird.f32 %v65_v30 }
  0x87   :  { %157 = vpow2.f32 %v143_v29  ;;  %v80_v49 = vor.u32 1.1754944e-38, %v79_v41  ;;  %vm78_vm5 = vcmp.eq.f32.partialorder %v77_v40, 8.507059e+37 }
  0x88   :  { %v95_v52 = vor.u32 1.1754944e-38, %v94_v44  ;;  %vm93_vm7 = vcmp.eq.f32.partialorder %v92_v46, 8.507059e+37 }
  0x8a   :  { %v152_v31 = vpop.eup %151 }
  0x8b   :  { %v154_v32 = vpop.eup %153  ;;  %v66_v33 = vadd.f32 1.0, %v152_v31 }
  0x8c   :  { %v156_v34 = vpop.eup %155  ;;  %v69_v35 = vmul.f32 %v154_v32, %v64_v28  ;;  %vm74_vm0 = vweird.f32 %v154_v32 }
  0x8d   :  { %v158_v36 = vpop.eup %157  ;;  %v84_v37 = vmul.f32 %v156_v34, %v65_v30  ;;  %159 = vrcp.f32 %v66_v33  ;;  %vm89_vm1 = vweird.f32 %v156_v34  ;;  %vm75_vm3 = vmor %vm73_vm2, %vm74_vm0  ;;  %v109_v61 = vand.u32 2147483648, %v66_v33 }
  0x8e   :  { %v70_v38 = vsub.f32 1.0, %v69_v35  ;;  %v67_v39 = vadd.f32 1.0, %v158_v36  ;;  %vm90_vm6 = vmor %vm88_vm4, %vm89_vm1  ;;  %v107_v0 = vand.u32 2147483647, %v66_v33  ;;  %vm103_vm9 = vweird.f32 %v66_v33 }
  0x8f   :  { %v85_v42 = vsub.f32 1.0, %v84_v37  ;;  %v110_v4 = vor.u32 1.1754944e-38, %v109_v61 }
  0x90   :  { %v71_v43 = vmul.f32 %v154_v32, %v70_v38  ;;  %161 = vrcp.f32 %v67_v39  ;;  %v124_v3 = vand.u32 2147483648, %v67_v39  ;;  %v122_v6 = vand.u32 2147483647, %v67_v39 }
  0x91   :  { %v86_v45 = vmul.f32 %v156_v34, %v85_v42  ;;  %vm108_vm12 = vcmp.eq.f32.partialorder %v107_v0, 8.507059e+37  ;;  %vm118_vm13 = vweird.f32 %v67_v39 }
  0x92   :  { %v72_v47 = vadd.f32 %v154_v32, %v71_v43  ;;  %v125_v10 = vor.u32 1.1754944e-38, %v124_v3  ;;  %vm123_vm15 = vcmp.eq.f32.partialorder %v122_v6, 8.507059e+37 }
  0x93   :  { %v160_v48 = vpop.eup %159  ;;  %v87_v50 = vadd.f32 %v156_v34, %v86_v45 }
  0x94   :  { %v76_v51 = vsel %vm75_vm3, %v154_v32, %v72_v47  ;;  %v99_v53 = vmul.f32 %v160_v48, %v66_v33  ;;  %vm104_vm8 = vweird.f32 %v160_v48 }
  0x95   :  { %v81_v54 = vsel %vm78_vm5, %v80_v49, %v76_v51  ;;  %v91_v55 = vsel %vm90_vm6, %v156_v34, %v87_v50  ;;  %vm105_vm10 = vmor %vm103_vm9, %vm104_vm8 }
  0x96   :  { %v162_v56 = vpop.eup %161  ;;  %v96_v57 = vsel %vm93_vm7, %v95_v52, %v91_v55  ;;  %v128_v58 = vmul.f32 %v81_v54, %v202_v13  ;;  %v100_v59 = vsub.f32 1.0, %v99_v53 }
  0x97   :  { %v129_v60 = vmul.f32 %v96_v57, %v204_v14  ;;  %v114_v62 = vmul.f32 %v162_v56, %v67_v39  ;;  %vm119_vm11 = vweird.f32 %v162_v56 }
  0x98   :  { %132 = vst [vmem:[%s233_s3] sm:$0xff] %v128_v58  ;;  %v101_v63 = vmul.f32 %v160_v48, %v100_v59  ;;  %vm120_vm14 = vmor %vm118_vm13, %vm119_vm11 }
  0x99   :  { %133 = vst [vmem:[%s233_s3 + $0x8] sm:$0xff] %v129_v60  ;;  %v115_v1 = vsub.f32 1.0, %v114_v62 }
  0x9a   :  { %v102_v2 = vadd.f32 %v160_v48, %v101_v63 }
  0x9b   :  { %v116_v5 = vmul.f32 %v162_v56, %v115_v1 }
  0x9c   :  { %v106_v7 = vsel %vm105_vm10, %v160_v48, %v102_v2 }
  0x9d   :  { %v111_v8 = vsel %vm108_vm12, %v110_v4, %v106_v7  ;;  %v117_v9 = vadd.f32 %v162_v56, %v116_v5 }
  0x9e   :  { %v130_v11 = vmul.f32 %v111_v8, %v208_v23 }
  0x9f   :  { %v121_v12 = vsel %vm120_vm14, %v162_v56, %v117_v9 }
  0xa0   :  { %v126_v13 = vsel %vm123_vm15, %v125_v10, %v121_v12  ;;  %134 = vst [vmem:[%s233_s3 + $0x10] sm:$0xff] %v130_v11 }
  0xa1   :  { %v131_v14 = vmul.f32 %v126_v13, %v210_v24 }
  0xa3   :  { %135 = vst [vmem:[%s233_s3 + $0x18] sm:$0xff] %v131_v14 }

// kernel: a_call__.2
= control target key start
LH: loop header
LB: loop body
LE: loop exit
PB: predicated region body
PF: predicated region fallthrough
CT: control target
= control target key end

     0   :  { %s2890_s15 = smov 0   ;;  %s4322_s0 = inlined_call_operand.vmem [shape: bf16[2,4,18,18], index: 0, kind: input, shape index: {}]   ;;  %s4323_s1 = inlined_call_operand.vmem [shape: bf16[8,36], index: 1, kind: input, shape index: {}]   ;;  %s4324_s2 = inlined_call_operand.vmem [shape: bf16[2,8,256], index: 2, kind: output, shape index: {0}]   ;;  %s4325_s3 = inlined_call_operand.vmem [shape: f32[2,8,1], index: 3, kind: output, shape index: {1}]   ;;  %s4326_s4 = inlined_call_operand.vmem [shape: f32[2,8,1], index: 4, kind: output, shape index: {2}]  }
   0x1 LB: > { %s2779_s16 = sadd.s32 4294967295, %s2852_s15   ;;  %p2783_p0 = scmp.ge.s32.totalorder %s2852_s15, 1  ;;  %s2852_s15 = sphi %s2890_s15, %s15_s15  }
   0x2   : > { %p167_p1 = scmp.lt.s32.totalorder %s2852_s15, 3 }
   0x4   : > { %p168_p2 = pnand %p2783_p0, %p167_p1 }
   0x5   : > { %p201_p3 = scmp.lt.s32.totalorder (!%p168_p2), %s2779_s16, 1  ;;  %s2856_s21 = smov (!%p168_p2), 64  }
   0x6   : > { %171 = sbr.rel (%p168_p2) target bundleno = 1072 (0x430), region = 28  ;;  %s2857_s22 = smov (!%p168_p2), 16  }
   0x7   : > { %s2858_s23 = smov (!%p168_p2), 32   ;;  %s2859_s24 = smov (!%p168_p2), 80  }
   0x8   : > { %s2860_s25 = smov (!%p168_p2), 112   ;;  %s2861_s26 = smov (!%p168_p2), 48  }
   0x9   : > { %s2862_s27 = smov (!%p168_p2), 96   ;;  %s2863_s28 = smov (!%p168_p2), 127  }
   0xa   : > { %s2864_s29 = smov (!%p168_p2), 126  }
   0xb   : > { %s4335_s16 = smov (!%p201_p3, %s2779_s16), 1  ;;  %v2854_v0 = vmov 1983009808   ;;  %v2855_v6 = vmov 1934713408   ;;  %vm267_vm0 = vcmask 1047556  }
   0xc   : > { %v258_v1 = vunpack.c.l.s4 %v2854_v0  ;;  %s2818_s17 = smul.u32 48, %s4335_s16  ;;  %v272_v7 = vunpack.c.l.s4 %v2855_v6  ;;  %vm431_vm1 = vcmask 130048   ;;  %vm435_vm2 = vcmask 261120   ;;  %s2813_s6 = sshll.u32 %s4335_s16, 3 }
   0xd   : > { %vm438_vm3 = vcmask 392192   ;;  %vm441_vm4 = vcmask 523264   ;;  %vm444_vm5 = vcmask 654336   ;;  %vm447_vm6 = vcmask 785408   ;;  %s210_s9 = scalar_lea.vmem %s4324_s2, %s2813_s6  ;;  %s214_s12 = scalar_lea.vmem %s4325_s3, %s2813_s6 }
   0xe   : > { %s2904_s20 = scalar_lea.vmem %s4322_s0, %s2818_s17  ;;  %v2906_v2 = vunpack.c.0.s8 %v258_v1  ;;  %v2934_v18 = vunpack.c.0.s8 %v272_v7  ;;  %vm450_vm7 = vcmask 916480   ;;  %vm986_vm8 = vsmask.f32 3328  ;;  %s218_s16 = scalar_lea.vmem %s4326_s4, %s2813_s6 }
   0xf   : > { %v2909_v3 = vld [vmem:[%s2904_s20] sm:$0xf]  ;;  %v2912_v4 = vld [vmem:[%s2904_s20 + $0xc] sm:$0xf]  ;;  %v2915_v5 = vld [vmem:[%s2904_s20 + $0x18] sm:$0xf] }
  0x10   : > { %v2918_v8 = vld [vmem:[%s2904_s20 + $0x24] sm:$0xf]  ;;  %v234_v9 = vpack.i.b16 %v2912_v4, %v2909_v3  ;;  %v235_v10 = vshrl.u32 %v2909_v3, 16  ;;  %v236_v11 = vshrl.u32 %v2912_v4, 16  ;;  %v241_v12 = vshrl.u32 %v2915_v5, 16 }
  0x11   : > { %v240_v13 = vpack.i.b16 %v2918_v8, %v2915_v5  ;;  %v242_v14 = vshrl.u32 %v2918_v8, 16  ;;  %v2943_v23 = vld [vmem:[%s2904_s20 + $0x4] sm:$0xf]  ;;  %v2946_v24 = vld [vmem:[%s2904_s20 + $0x10] sm:$0xf]  ;;  %vm1812_vm11 = vcmask 1042432  }
  0x12   : > { %v260_v15 = vperm.slane %v234_v9, %v2906_v2  ;;  %v237_v16 = vpack.i.b16 %v236_v11, %v235_v10  ;;  %v2950_v26 = vld [vmem:[%s2904_s20 + $0x1c] sm:$0xf]  ;;  %v2956_v29 = vld [vmem:[%s2904_s20 + $0x28] sm:$0xf]  ;;  %v247_v30 = vshrl.u32 %v2943_v23, 16  ;;  %v248_v31 = vshrl.u32 %v2946_v24, 16 }
  0x13   : > { %v265_v17 = vperm.slane %v240_v13, %v2906_v2  ;;  %v243_v19 = vpack.i.b16 %v242_v14, %v241_v12  ;;  %v253_v34 = vshrl.u32 %v2950_v26, 16  ;;  %v254_v38 = vshrl.u32 %v2956_v29, 16 }
  0x14   : > { %v269_v20 = vrot.slane %v260_v15, 4  ;;  %v287_v21 = vperm.slane %v237_v16, %v2906_v2  ;;  %v249_v37 = vpack.i.b16 %v248_v31, %v247_v30  ;;  %v246_v49 = vpack.i.b16 %v2946_v24, %v2943_v23 }
  0x15   : > { %v292_v22 = vperm.slane %v243_v19, %v2906_v2  ;;  %v266_v39 = vrot.slane %v265_v17, 4  ;;  %v255_v41 = vpack.i.b16 %v254_v38, %v253_v34  ;;  %v252_v50 = vpack.i.b16 %v2956_v29, %v2950_v26 }
  0x16   : > { %v270_v25 = vsel %vm267_vm0, %v265_v17, %v269_v20  ;;  %v295_v43 = vrot.slane %v287_v21, 4  ;;  %v339_v44 = vperm.slane %v249_v37, %v2906_v2  ;;  %v313_v55 = vperm.slane %v246_v49, %v2906_v2 }
  0x17   : > { %v2953_v27 = vperm.slane %v270_v25, %v2934_v18  ;;  %v293_v28 = vrot.slane %v292_v22, 4  ;;  %v344_v45 = vperm.slane %v255_v41, %v2906_v2  ;;  %v268_v46 = vsel %vm267_vm0, %v266_v39, %v260_v15 }
  0x18   : > { %v2979_v48 = vperm.slane %v268_v46, %v2934_v18  ;;  %v296_v53 = vsel %vm267_vm0, %v292_v22, %v295_v43  ;;  %v318_v57 = vperm.slane %v252_v50, %v2906_v2  ;;  %v347_v59 = vrot.slane %v339_v44, 4 }
  0x19   : > { %v377_v32 = vunpack.c.l.b16 %v2953_v27  ;;  %v294_v33 = vsel %vm267_vm0, %v293_v28, %v287_v21  ;;  %v345_v47 = vrot.slane %v344_v45, 4  ;;  %v304_v58 = vperm.slane %v296_v53, %v2934_v18 }
  0x1a   : > { %v300_v35 = vperm.slane %v294_v33, %v2934_v18  ;;  %v279_v52 = vrot.slane %v2979_v48, 4  ;;  %v321_v62 = vrot.slane %v313_v55, 4  ;;  %v319_v9 = vrot.slane %v318_v57, 4 }
  0x1b   : > { %v378_v36 = vpack.c.b16 %v377_v32, %v377_v32  ;;  %v346_v51 = vsel %vm267_vm0, %v345_v47, %v339_v44  ;;  %v307_v63 = vrot.slane %v304_v58, 4  ;;  %v382_v0 = vunpack.c.l.b16 %v304_v58 }
  0x1c   : > { %v362_v40 = vunpack.c.l.b16 %v300_v35  ;;  %v352_v54 = vperm.slane %v346_v51, %v2934_v18  ;;  %v280_v56 = vsel %vm267_vm0, 0, %v279_v52  ;;  %v322_v7 = vsel %vm267_vm0, %v318_v57, %v321_v62 }
  0x1d   : > { %379 = vrot.lane.b32.xlu1 %v378_v36, %s2856_s21  ;;  %v367_v61 = vunpack.c.l.b16 %v280_v56  ;;  %v330_v13 = vperm.slane %v322_v7, %v2934_v18  ;;  %v308_v15 = vsel %vm267_vm0, 0, %v307_v63  ;;  %v383_v16 = vpack.c.b16 %v382_v0, %v382_v0 }
  0x1e   : > { %v363_v42 = vpack.c.b16 %v362_v40, %v362_v40  ;;  %v397_v60 = vunpack.c.l.b16 %v352_v54  ;;  %v392_v17 = vunpack.c.l.b16 %v308_v15  ;;  %v348_v19 = vsel %vm267_vm0, %v344_v45, %v347_v59 }
  0x1f   : > { %v368_v6 = vpack.c.b16 %v367_v61, %v367_v61  ;;  %v305_v20 = vrot.slane %v300_v35, 4  ;;  %v412_v21 = vunpack.c.l.b16 %v330_v13  ;;  %384 = vrot.lane.b32.xlu2 %v383_v16, %s2859_s24  ;;  %v357_v22 = vrot.slane %v352_v54, 4 }
  0x20   : > { %364 = vrot.lane.b32.xlu0 %v363_v42, %s2857_s22  ;;  %v398_v1 = vpack.c.b16 %v397_v60, %v397_v60  ;;  %v356_v25 = vperm.slane %v348_v19, %v2934_v18  ;;  %v281_v28 = vrot.slane %v2953_v27, 4  ;;  %v320_v33 = vsel %vm267_vm0, %v319_v9, %v313_v55 }
  0x21   : > { %v413_v36 = vpack.c.b16 %v412_v21, %v412_v21  ;;  %v393_v37 = vpack.c.b16 %v392_v17, %v392_v17  ;;  %v306_v39 = vsel %vm267_vm0, 0, %v305_v20  ;;  %v358_v40 = vsel %vm267_vm0, 0, %v357_v22 }
  0x22   : > { %v417_v32 = vunpack.c.l.b16 %v356_v25  ;;  %v282_v35 = vsel %vm267_vm0, 0, %v281_v28  ;;  %v326_v42 = vperm.slane %v320_v33, %v2934_v18  ;;  %v372_v27 = vunpack.c.l.b16 %v306_v39 }
  0x23   : > { %v407_v43 = vunpack.c.l.b16 %v358_v40  ;;  %v359_v44 = vrot.slane %v356_v25, 4  ;;  %v333_v45 = vrot.slane %v330_v13, 4  ;;  %v387_v46 = vunpack.c.l.b16 %v282_v35 }
  0x24   : > { %v418_v41 = vpack.c.b16 %v417_v32, %v417_v32  ;;  %v331_v47 = vrot.slane %v326_v42, 4  ;;  %v373_v49 = vpack.c.b16 %v372_v27, %v372_v27  ;;  %vm987_vm9 = vsmask.f32 7440 }
  0x25   : > { %399 = vrot.lane.b32.xlu1 %v398_v1, %s2857_s22  ;;  %v408_v50 = vpack.c.b16 %v407_v43, %v407_v43  ;;  %v360_v51 = vsel %vm267_vm0, 0, %v359_v44  ;;  %v334_v52 = vsel %vm267_vm0, 0, %v333_v45  ;;  %v388_v53 = vpack.c.b16 %v387_v46, %v387_v46  ;;  %vm3226_vm10 = vmor %vm986_vm8, %vm987_vm9 }
  0x26   : > { %v332_v54 = vsel %vm267_vm0, 0, %v331_v47  ;;  %v427_v55 = vunpack.c.l.b16 %v360_v51  ;;  %v422_v56 = vunpack.c.l.b16 %v334_v52  ;;  %vm1813_vm12 = vcmask 1046532  }
  0x27   : > { %419 = vrot.lane.b32.xlu2 %v418_v41, %s2859_s24  ;;  %v402_v57 = vunpack.c.l.b16 %v332_v54  ;;  %vm3443_vm13 = vmor %vm1812_vm11, %vm1813_vm12  ;;  %vm2616_vm14 = vcmask 1041408   ;;  %vm2612_vm15 = vcmask 293888  }
  0x28   : > { %369 = vrot.lane.b32.xlu0 %v368_v6, %s2858_s23  ;;  %v428_v58 = vpack.c.b16 %v427_v55, %v427_v55  ;;  %v423_v59 = vpack.c.b16 %v422_v56, %v422_v56 }
  0x29   : > { %v403_v60 = vpack.c.b16 %v402_v57, %v402_v57 }
  0x2d   : > { %414 = vrot.lane.b32.xlu1 %v413_v36, %s2856_s21 }
  0x2f   : > { %389 = vrot.lane.b32.xlu2 %v388_v53, %s2862_s27 }
  0x30   : > { %394 = vrot.lane.b32.xlu0 %v393_v37, %s2860_s25 }
  0x35   : > { %374 = vrot.lane.b32.xlu1 %v373_v49, %s2861_s26 }
  0x37   : > { %404 = vrot.lane.b32.xlu2 %v403_v60, %s2858_s23 }
  0x38   : > { %409 = vrot.lane.b32.xlu0 %v408_v50, %s2861_s26 }
  0x3d   : > { %429 = vrot.lane.b32.xlu1 %v428_v58, %s2860_s25 }
  0x3f   : > { %483 = vrot.lane.b32.xlu2 %v2909_v3, %s2863_s28 }
  0x40   : > { %424 = vrot.lane.b32.xlu0 %v423_v59, %s2862_s27 }
  0x45   : > { %487 = vrot.lane.b32.xlu1 %v2912_v4, %s2863_s28 }
  0x47   : > { %489 = vrot.lane.b32.xlu2 %v2946_v24, %s2863_s28 }
  0x48   : > { %485 = vrot.lane.b32.xlu0 %v2943_v23, %s2863_s28 }
  0x4d   : > { %493 = vrot.lane.b32.xlu1 %v2950_v26, %s2863_s28 }
  0x4f   : > { %495 = vrot.lane.b32.xlu2 %v2918_v8, %s2863_s28 }
  0x50   : > { %491 = vrot.lane.b32.xlu0 %v2915_v5, %s2863_s28 }
  0x55   : > { %737 = vrot.lane.b32.xlu1 %v2943_v23, %s2864_s29 }
  0x57   : > { %739 = vrot.lane.b32.xlu2 %v2912_v4, %s2864_s29 }
  0x58   : > { %497 = vrot.lane.b32.xlu0 %v2956_v29, %s2863_s28 }
  0x5d   : > { %743 = vrot.lane.b32.xlu1 %v2915_v5, %s2864_s29 }
  0x5f   : > { %745 = vrot.lane.b32.xlu2 %v2950_v26, %s2864_s29 }
  0x60   : > { %735 = vrot.lane.b32.xlu0 %v2909_v3, %s2864_s29 }
  0x65   : > { %749 = vrot.lane.b32.xlu1 %v2956_v29, %s2864_s29 }
  0x68   : > { %741 = vrot.lane.b32.xlu0 %v2946_v24, %s2864_s29 }
  0x70   : > { %747 = vrot.lane.b32.xlu0 %v2918_v8, %s2864_s29 }
  0x79   : > { %v385_v61 = vpop.permute.xlu2 %384 }
  0x81   : > { %v420_v62 = vpop.permute.xlu2 %419 }
  0x89   : > { %v390_v1 = vpop.permute.xlu2 %389 }
  0x8f   : > { %v380_v63 = vpop.permute.xlu1 %379 }
  0x91   : > { %v405_v9 = vpop.permute.xlu2 %404 }
  0x92   : > { %v365_v0 = vpop.permute.xlu0 %364 }
  0x93   : > { %v434_v17 = vsel %vm431_vm1, %v2979_v48, %v365_v0 }
  0x97   : > { %v400_v6 = vpop.permute.xlu1 %399 }
  0x98   : > { %v455_v16 = vsel %vm431_vm1, %v326_v42, %v400_v6 }
  0x99   : > { %v457_v19 = vsel %vm435_vm2, %v455_v16, %v405_v9  ;;  %v484_v20 = vpop.permute.xlu2 %483 }
  0x9a   : > { %v370_v7 = vpop.permute.xlu0 %369  ;;  %v502_v53 = vshrl.u32 %v484_v20, 16 }
  0x9b   : > { %v437_v21 = vsel %vm435_vm2, %v434_v17, %v370_v7 }
  0x9f   : > { %v415_v13 = vpop.permute.xlu1 %414 }
  0xa1   : > { %v490_v43 = vpop.permute.xlu2 %489 }
  0xa2   : > { %v395_v15 = vpop.permute.xlu0 %394  ;;  %v515_v56 = vshrl.u32 %v490_v43, 16 }
  0xa7   : > { %v375_v22 = vpop.permute.xlu1 %374 }
  0xa8   : > { %v440_v28 = vsel %vm438_vm3, %v437_v21, %v375_v22 }
  0xa9   : > { %v443_v32 = vsel %vm441_vm4, %v440_v28, %v380_v63  ;;  %v496_v51 = vpop.permute.xlu2 %495 }
  0xaa   : > { %v410_v25 = vpop.permute.xlu0 %409  ;;  %v446_v36 = vsel %vm444_vm5, %v443_v32, %v385_v61  ;;  %v509_v55 = vshrl.u32 %v496_v51, 16 }
  0xab   : > { %v459_v33 = vsel %vm438_vm3, %v457_v19, %v410_v25  ;;  %v449_v48 = vsel %vm447_vm6, %v446_v36, %v390_v1 }
  0xac   : > { %v461_v37 = vsel %vm441_vm4, %v459_v33, %v415_v13  ;;  %v452_v40 = vsel %vm450_vm7, %v449_v48, %v395_v15 }
  0xad   : > { %v463_v41 = vsel %vm444_vm5, %v461_v37, %v420_v62  ;;  %v470_v44 = vunpack.c.l.b16 %v452_v40 }
  0xaf   : > { %v430_v39 = vpop.permute.xlu1 %429 }
  0xb2   : > { %v425_v35 = vpop.permute.xlu0 %424 }
  0xb3   : > { %v465_v42 = vsel %vm447_vm6, %v463_v41, %v425_v35  ;;  %v740_v35 = vpop.permute.xlu2 %739 }
  0xb4   : > { %v467_v27 = vsel %vm450_vm7, %v465_v42, %v430_v39 }
  0xb5   : > { %v471_v45 = vunpack.c.l.b16 %v467_v27 }
  0xb7   : > { %v472_v46 = vpack.c.b16 %v471_v45, %v470_v44  ;;  %v488_v47 = vpop.permute.xlu1 %487 }
  0xb8   : > { %v501_v50 = vpack.i.b16 %v488_v47, %v484_v20  ;;  %v503_v54 = vshrl.u32 %v488_v47, 16 }
  0xb9   : > { %474 = vst [vmem:[#allocation2] sm:$0x33] %v472_v46 }
  0xba   : > { %v486_v49 = vpop.permute.xlu0 %485  ;;  %v3067_v52 = vperm.slane %v501_v50, %v2906_v2  ;;  %v504_v63 = vpack.i.b16 %v503_v54, %v502_v53 }
  0xbb   : > { %v514_v60 = vshrl.u32 %v486_v49, 16  ;;  %v513_v0 = vpack.i.b16 %v490_v43, %v486_v49 }
  0xbc   : > { %v535_v59 = vrot.slane %v3067_v52, 4  ;;  %v3082_v16 = vperm.slane %v504_v63, %v2906_v2 }
  0xbd   : > { %v516_v7 = vpack.i.b16 %v515_v56, %v514_v60  ;;  %v3085_v17 = vperm.slane %v513_v0, %v2906_v2 }
  0xbf   : > { %v494_v57 = vpop.permute.xlu1 %493  ;;  %v3090_v28 = vperm.slane %v516_v7, %v2906_v2  ;;  %v587_v39 = vrot.slane %v3085_v17, 4 }
  0xc0   : > { %v520_v19 = vshrl.u32 %v494_v57, 16 }
  0xc1   : > { %v613_v42 = vrot.slane %v3090_v28, 4 }
  0xc2   : > { %v492_v58 = vpop.permute.xlu0 %491 }
  0xc3   : > { %v507_v61 = vpack.i.b16 %v496_v51, %v492_v58  ;;  %v508_v62 = vshrl.u32 %v492_v58, 16 }
  0xc5   : > { %v510_v1 = vpack.i.b16 %v509_v55, %v508_v62  ;;  %v3071_v6 = vperm.slane %v507_v61, %v2906_v2  ;;  %v755_v61 = vshrl.u32 %v740_v35, 16 }
  0xc7   : > { %v3074_v9 = vperm.slane %v510_v1, %v2906_v2  ;;  %v536_v13 = vsel %vm267_vm0, %v3071_v6, %v535_v59  ;;  %v738_v21 = vpop.permute.xlu1 %737  ;;  %v746_v59 = vpop.permute.xlu2 %745 }
  0xc8   : > { %v3079_v15 = vperm.slane %v536_v13, %v2934_v18  ;;  %v772_v13 = vshrl.u32 %v746_v59, 16 }
  0xc9   : > { %v559_v20 = vrot.slane %v3074_v9, 4 }
  0xca   : > { %v498_v22 = vpop.permute.xlu0 %497  ;;  %v643_v25 = vunpack.c.l.b16 %v3079_v15 }
  0xcb   : > { %v519_v32 = vpack.i.b16 %v498_v22, %v494_v57  ;;  %v521_v33 = vshrl.u32 %v498_v22, 16  ;;  %v560_v36 = vsel %vm267_vm0, %v559_v20, %v3082_v16 }
  0xcc   : > { %v644_v48 = vpack.c.b16 %v643_v25, %v643_v25  ;;  %v3095_v37 = vperm.slane %v560_v36, %v2934_v18 }
  0xcd   : > { %v522_v40 = vpack.i.b16 %v521_v33, %v520_v19  ;;  %v3099_v41 = vperm.slane %v519_v32, %v2906_v2 }
  0xce   : > { %645 = vrot.lane.b32.xlu1 %v644_v48, %s2856_s21  ;;  %v628_v44 = vunpack.c.l.b16 %v3095_v37  ;;  %v766_v48 = vshrl.u32 %v738_v21, 16 }
  0xcf   : > { %v3104_v27 = vperm.slane %v522_v40, %v2906_v2  ;;  %v588_v43 = vsel %vm267_vm0, %v3099_v41, %v587_v39  ;;  %v744_v47 = vpop.permute.xlu1 %743 }
  0xd0   : > { %v596_v45 = vperm.slane %v588_v43, %v2934_v18  ;;  %v629_v54 = vpack.c.b16 %v628_v44, %v628_v44  ;;  %v760_v43 = vshrl.u32 %v744_v47, 16 }
  0xd1   : > { %v614_v46 = vsel %vm267_vm0, %v3104_v27, %v613_v42 }
  0xd2   : > { %v736_v49 = vpop.permute.xlu0 %735  ;;  %v678_v50 = vunpack.c.l.b16 %v596_v45  ;;  %v3113_v51 = vperm.slane %v614_v46, %v2934_v18  ;;  %v599_v53 = vrot.slane %v596_v45, 4 }
  0xd3   : > { %v754_v62 = vshrl.u32 %v736_v49, 16  ;;  %v753_v20 = vpack.i.b16 %v740_v35, %v736_v49 }
  0xd4   : > { %v679_v55 = vpack.c.b16 %v678_v50, %v678_v50  ;;  %v683_v56 = vunpack.c.l.b16 %v3113_v51  ;;  %v600_v57 = vsel %vm267_vm0, 0, %v599_v53 }
  0xd5   : > { %v688_v60 = vunpack.c.l.b16 %v600_v57  ;;  %v756_v32 = vpack.i.b16 %v755_v61, %v754_v62  ;;  %v3125_v39 = vperm.slane %v753_v20, %v2906_v2 }
  0xd6   : > { %630 = vrot.lane.b32.xlu1 %v629_v54, %s2857_s22  ;;  %680 = vrot.lane.b32.xlu2 %v679_v55, %s2856_s21  ;;  %v684_v58 = vpack.c.b16 %v683_v56, %v683_v56 }
  0xd7   : > { %v750_v63 = vpop.permute.xlu1 %749  ;;  %v689_v19 = vpack.c.b16 %v688_v60, %v688_v60  ;;  %v3132_v35 = vperm.slane %v756_v32, %v2906_v2  ;;  %v787_v53 = vrot.slane %v3125_v39, 4 }
  0xd8   : > { %685 = vrot.lane.b32.xlu0 %v684_v58, %s2859_s24  ;;  %v773_v1 = vshrl.u32 %v750_v63, 16  ;;  %v771_v7 = vpack.i.b16 %v750_v63, %v746_v59 }
  0xd9   : > { %v813_v57 = vrot.slane %v3132_v35, 4 }
  0xda   : > { %v742_v0 = vpop.permute.xlu0 %741  ;;  %v3121_v22 = vperm.slane %v771_v7, %v2906_v2  ;;  %v774_v33 = vpack.i.b16 %v773_v1, %v772_v13 }
  0xdb   : > { %v765_v25 = vpack.i.b16 %v742_v0, %v738_v21  ;;  %v767_v36 = vshrl.u32 %v742_v0, 16  ;;  %v561_v21 = vrot.slane %v3082_v16, 4  ;;  %v1031_v0 = vshll.u32 %v2915_v5, 16 }
  0xdc   : > { %v837_v40 = vrot.slane %v3121_v22, 4  ;;  %v3135_v45 = vperm.slane %v774_v33, %v2906_v2 }
  0xdd   : > { %v3129_v42 = vperm.slane %v765_v25, %v2906_v2  ;;  %v768_v46 = vpack.i.b16 %v767_v36, %v766_v48  ;;  %v562_v61 = vsel %vm267_vm0, %v3074_v9, %v561_v21  ;;  %v1011_v48 = vshll.u32 %v2912_v4, 16 }
  0xde   : > { %690 = vrot.lane.b32.xlu1 %v689_v19, %s2862_s27  ;;  %v863_v58 = vrot.slane %v3135_v45, 4  ;;  %v991_v19 = vshll.u32 %v2909_v3, 16  ;;  %v570_v20 = vperm.slane %v562_v61, %v2934_v18  ;;  %v1010_v3 = vrot.slane %v236_v11, 4 }
  0xdf   : > { %v838_v56 = vsel %vm267_vm0, %v837_v40, %v3129_v42  ;;  %v3147_v59 = vperm.slane %v768_v46, %v2906_v2  ;;  %v1051_v40 = vshll.u32 %v2918_v8, 16  ;;  %v1030_v46 = vrot.slane %v241_v12, 4 }
  0xe0   : > { %v3158_v62 = vperm.slane %v838_v56, %v2934_v18  ;;  %v585_v56 = vrot.slane %v3099_v41, 4  ;;  %v993_v5 = vrot.slane %v991_v19, 5  ;;  %v1050_v12 = vrot.slane %v242_v14, 4 }
  0xe1   : > { %v864_v9 = vsel %vm267_vm0, %v863_v58, %v3147_v59  ;;  %v1053_v58 = vrot.slane %v1051_v40, 5  ;;  %v533_v61 = vrot.slane %v3071_v6, 4  ;;  %v1036_v4 = vshll.u32 %v2950_v26, 16 }
  0xe2   : > { %v748_v44 = vpop.permute.xlu0 %747  ;;  %v849_v36 = vrot.slane %v3158_v62, 4  ;;  %v3180_v21 = vperm.slane %v864_v9, %v2934_v18  ;;  %v1056_v6 = vshll.u32 %v2956_v29, 16 }
  0xe3   : > { %v759_v49 = vpack.i.b16 %v748_v44, %v744_v47  ;;  %v761_v50 = vshrl.u32 %v748_v44, 16  ;;  %v1054_v19 = vor.u32 %v1053_v58, %v1050_v12  ;;  %v534_v40 = vsel %vm267_vm0, %v533_v61, %v3067_v52 }
  0xe4   : > { %v3224_v52 = vperm.slane %v534_v40, %v2934_v18 }
  0xe5   : > { %v762_v54 = vpack.i.b16 %v761_v50, %v760_v43  ;;  %v3140_v55 = vperm.slane %v759_v49, %v2906_v2  ;;  %v611_v43 = vrot.slane %v3104_v27, 4  ;;  %v1033_v49 = vrot.slane %v1031_v0, 5 }
  0xe6   : > { %v648_v27 = vunpack.c.l.b16 %v570_v20  ;;  %v547_v0 = vrot.slane %v3079_v15, 4 }
  0xe7   : > { %v3150_v47 = vperm.slane %v762_v54, %v2906_v2  ;;  %v788_v16 = vsel %vm267_vm0, %v3140_v55, %v787_v53  ;;  %v990_v54 = vrot.slane %v235_v10, 4  ;;  %v1013_v10 = vrot.slane %v1011_v48, 5 }
  0xe8   : > { %v796_v60 = vperm.slane %v788_v16, %v2934_v18  ;;  %v612_v16 = vsel %vm267_vm0, %v611_v43, %v3090_v28  ;;  %v1034_v41 = vor.u32 %v1033_v49, %v1030_v46  ;;  %v649_v8 = vpack.c.b16 %v648_v27, %v648_v27 }
  0xe9   : > { %v814_v63 = vsel %vm267_vm0, %v3150_v47, %v813_v57  ;;  %v850_v57 = vsel %vm267_vm0, 0, %v849_v36  ;;  %v618_v14 = vperm.slane %v612_v16, %v2934_v18  ;;  %v994_v28 = vor.u32 %v993_v5, %v990_v54 }
  0xea   : > { %v895_v1 = vunpack.c.l.b16 %v796_v60  ;;  %v3164_v7 = vperm.slane %v814_v63, %v2934_v18  ;;  %v799_v13 = vrot.slane %v796_v60, 4  ;;  %v915_v60 = vunpack.c.l.b16 %v3180_v21 }
  0xeb   : > { %v920_v63 = vunpack.c.l.b16 %v850_v57  ;;  %v811_v11 = vrot.slane %v3150_v47, 4  ;;  %v1014_v9 = vor.u32 %v1013_v10, %v1010_v3  ;;  %v785_v36 = vrot.slane %v3140_v55, 4 }
  0xec   : > { %v896_v25 = vpack.c.b16 %v895_v1, %v895_v1  ;;  %v900_v32 = vunpack.c.l.b16 %v3164_v7  ;;  %v800_v33 = vsel %vm267_vm0, 0, %v799_v13  ;;  %v573_v1 = vrot.slane %v570_v20, 4 }
  0xed   : > { %v905_v44 = vunpack.c.l.b16 %v800_v33  ;;  %v586_v13 = vsel %vm267_vm0, %v585_v56, %v3085_v17  ;;  %v916_v15 = vpack.c.b16 %v915_v60, %v915_v60  ;;  %v921_v33 = vpack.c.b16 %v920_v63, %v920_v63 }
  0xee   : > { %897 = vrot.lane.b32.xlu2 %v896_v25, %s2856_s21  ;;  %v901_v50 = vpack.c.b16 %v900_v32, %v900_v32  ;;  %v1035_v25 = vrot.slane %v1034_v41, 4  ;;  %v996_v32 = vshll.u32 %v2943_v23, 16  ;;  %v548_v20 = vsel %vm267_vm0, 0, %v547_v0 }
  0xef   : > { %v906_v53 = vpack.c.b16 %v905_v44, %v905_v44  ;;  %v3207_v17 = vperm.slane %v586_v13, %v2934_v18  ;;  %v663_v47 = vunpack.c.l.b16 %v618_v14  ;;  %v574_v48 = vsel %vm267_vm0, 0, %v573_v1 }
  0xf0   : > { %902 = vrot.lane.b32.xlu0 %v901_v50, %s2859_s24  ;;  %v1055_v43 = vrot.slane %v1054_v19, 4  ;;  %v1016_v44 = vshll.u32 %v2946_v24, 16  ;;  %v3215_v46 = vrot.slane %v1036_v4, 5  ;;  %v812_v49 = vsel %vm267_vm0, %v811_v11, %v3132_v35 }
  0xf1   : > { %907 = vrot.lane.b32.xlu1 %v906_v53, %s2862_s27  ;;  %v3220_v50 = vrot.slane %v1056_v6, 5  ;;  %v653_v55 = vunpack.c.l.b16 %v548_v20  ;;  %v658_v53 = vunpack.c.l.b16 %v574_v48  ;;  %v597_v54 = vrot.slane %v3207_v17, 4 }
  0xf2   : > { %v664_v27 = vpack.c.b16 %v663_v47, %v663_v47  ;;  %v818_v57 = vperm.slane %v812_v49, %v2934_v18  ;;  %v623_v5 = vrot.slane %v618_v14, 4  ;;  %v786_v35 = vsel %vm267_vm0, %v785_v36, %v3125_v39 }
  0xf3   : > { %v995_v12 = vrot.slane %v994_v28, 4  ;;  %v1015_v58 = vrot.slane %v1014_v9, 4  ;;  %v998_v16 = vrot.slane %v996_v32, 5  ;;  %v3233_v3 = vrot.slane %v1016_v44, 5 }
  0xf4   : > { %v654_v10 = vpack.c.b16 %v653_v55, %v653_v55  ;;  %v3239_v41 = vsel %vm3226_vm10, %v1035_v25, %v3215_v46  ;;  %v3244_v60 = vsel %vm3226_vm10, %v1055_v43, %v3220_v50  ;;  %v659_v61 = vpack.c.b16 %v658_v53, %v658_v53 }
  0xf5   : > { %v598_v39 = vsel %vm267_vm0, 0, %v597_v54  ;;  %v3248_v63 = vperm.slane %v786_v35, %v2934_v18  ;;  %v880_v0 = vunpack.c.l.b16 %v818_v57  ;;  %v545_v14 = vrot.slane %v3224_v52, 4 }
  0xf6   : > { %650 = vrot.lane.b32.xlu2 %v649_v8, %s2859_s24  ;;  %v624_v8 = vsel %vm267_vm0, 0, %v623_v5  ;;  %v1001_v1 = vrot.slane %v247_v30, 4  ;;  %v1078_v13 = vshrl.u32 %v3239_v41, 16  ;;  %v1079_v28 = vshrl.u32 %v3244_v60, 16 }
  0xf7   : > { %v1041_v19 = vrot.slane %v253_v34, 4  ;;  %v668_v4 = vunpack.c.l.b16 %v598_v39  ;;  %v3262_v11 = vsel %vm3226_vm10, %v995_v12, %v998_v16  ;;  %v3267_v9 = vsel %vm3226_vm10, %v1015_v58, %v3233_v3  ;;  %v3299_v12 = vld [vmem:[%s2904_s20 + $0x20] sm:$0x1]  ;;  %v3302_v58 = vld [vmem:[%s2904_s20 + $0x2c] sm:$0x1] }
  0xf8   : > { %917 = vrot.lane.b32.xlu0 %v916_v15, %s2857_s22  ;;  %v1061_v23 = vrot.slane %v254_v38, 4  ;;  %v673_v30 = vunpack.c.l.b16 %v624_v8  ;;  %v797_v25 = vrot.slane %v3248_v63, 4  ;;  %v823_v6 = vrot.slane %v818_v57, 4 }
  0xf9   : > { %922 = vrot.lane.b32.xlu1 %v921_v33, %s2858_s23  ;;  %v881_v15 = vpack.c.b16 %v880_v0, %v880_v0  ;;  %v546_v26 = vsel %vm267_vm0, 0, %v545_v14  ;;  %v865_v34 = vrot.slane %v3147_v59, 4  ;;  %v1072_v32 = vshrl.u32 %v3262_v11, 16 }
  0xfa   : > { %v1073_v33 = vshrl.u32 %v3267_v9, 16  ;;  %v1080_v20 = vpack.i.b16 %v1079_v28, %v1078_v13  ;;  %v1002_v36 = vor.u32 %v1001_v1, %v998_v16  ;;  %v1021_v47 = vrot.slane %v248_v31, 4  ;;  %v3313_v1 = vld [vmem:[%s2904_s20 + $0x8] sm:$0x1]  ;;  %v3316_v13 = vld [vmem:[%s2904_s20 + $0x14] sm:$0x1] }
  0xfb   : > { %v1042_v29 = vor.u32 %v1041_v19, %v3215_v46  ;;  %v669_v38 = vpack.c.b16 %v668_v4, %v668_v4  ;;  %v1062_v48 = vor.u32 %v1061_v23, %v3220_v50  ;;  %v674_v40 = vpack.c.b16 %v673_v30, %v673_v30 }
  0xfc   : > { %v798_v43 = vsel %vm267_vm0, 0, %v797_v25  ;;  %v824_v59 = vsel %vm267_vm0, 0, %v823_v6  ;;  %v633_v44 = vunpack.c.l.b16 %v546_v26  ;;  %v625_v49 = vrot.slane %v3113_v51, 4 }
  0xfd   : > { %v571_v24 = vrot.slane %v3095_v37, 4  ;;  %v866_v31 = vsel %vm267_vm0, %v3135_v45, %v865_v34  ;;  %v1074_v46 = vpack.i.b16 %v1073_v33, %v1072_v32  ;;  %v3290_v50 = vperm.slane %v1080_v20, %v2906_v2 }
  0xfe   : > { %665 = vrot.lane.b32.xlu2 %v664_v27, %s2857_s22  ;;  %v885_v55 = vunpack.c.l.b16 %v798_v43  ;;  %v890_v53 = vunpack.c.l.b16 %v824_v59  ;;  %v1003_v54 = vrot.slane %v1002_v36, 4  ;;  %v1022_v27 = vor.u32 %v1021_v47, %v3233_v3 }
  0xff   : > { %v1043_v57 = vrot.slane %v1042_v29, 4  ;;  %v1063_v51 = vrot.slane %v1062_v48, 4  ;;  %v634_v5 = vpack.c.b16 %v633_v44, %v633_v44  ;;  %v626_v37 = vsel %vm267_vm0, 0, %v625_v49 }
 0x100   : > { %655 = vrot.lane.b32.xlu0 %v654_v10, %s2862_s27  ;;  %v572_v35 = vsel %vm267_vm0, 0, %v571_v24  ;;  %v3296_v45 = vperm.slane %v866_v31, %v2934_v18  ;;  %v1123_v16 = vperm.slane %v1074_v46, %v2906_v2  ;;  %v1129_v3 = vrot.slane %v3290_v50, 4 }
 0x101   : > { %660 = vrot.lane.b32.xlu1 %v659_v61, %s2860_s25  ;;  %v1045_v10 = vshll.u32 %v3299_v12, 16  ;;  %v1065_v61 = vshll.u32 %v3302_v58, 16  ;;  %v839_v39 = vrot.slane %v3129_v42, 4  ;;  %v886_v0 = vpack.c.b16 %v885_v55, %v885_v55 }
 0x102   : > { %v891_v8 = vpack.c.b16 %v890_v53, %v890_v53  ;;  %v1071_v14 = vpack.i.b16 %v3267_v9, %v3262_v11  ;;  %v1005_v28 = vshll.u32 %v3313_v1, 16  ;;  %v1025_v19 = vshll.u32 %v3316_v13, 16 }
 0x103   : > { %v1047_v4 = vrot.slane %v1045_v10, 5  ;;  %v1067_v23 = vrot.slane %v1065_v61, 5  ;;  %v1023_v30 = vrot.slane %v1022_v27, 4  ;;  %v693_v42 = vunpack.c.l.b16 %v626_v37 }
 0x104   : > { %v638_v25 = vunpack.c.l.b16 %v572_v35  ;;  %v935_v6 = vunpack.c.l.b16 %v3296_v45  ;;  %v1130_v26 = vsel %vm267_vm0, %v1129_v3, %v1123_v16  ;;  %v1007_v34 = vrot.slane %v1005_v28, 5 }
 0x105   : > { %v1027_v32 = vrot.slane %v1025_v19, 5  ;;  %v1077_v33 = vpack.i.b16 %v3244_v60, %v3239_v41  ;;  %v1097_v20 = vperm.slane %v1071_v14, %v2906_v2  ;;  %v3330_v36 = vsel %vm3226_vm10, %v1043_v57, %v1047_v4 }
 0x106   : > { %882 = vrot.lane.b32.xlu2 %v881_v15, %s2857_s22  ;;  %v825_v15 = vrot.slane %v3164_v7, 4  ;;  %v3334_v47 = vsel %vm3226_vm10, %v1063_v51, %v1067_v23  ;;  %v840_v7 = vsel %vm267_vm0, %v3121_v22, %v839_v39  ;;  %v694_v29 = vpack.c.b16 %v693_v42, %v693_v42 }
 0x107   : > { %v3344_v48 = vsel %vm3226_vm10, %v1023_v30, %v1027_v32  ;;  %v639_v43 = vpack.c.b16 %v638_v25, %v638_v25  ;;  %v1136_v44 = vperm.slane %v1130_v26, %v2934_v18  ;;  %v1091_v49 = vshrl.u32 %v3334_v47, 16 }
 0x108   : > { %670 = vrot.lane.b32.xlu0 %v669_v38, %s2858_s23  ;;  %v3340_v38 = vsel %vm3226_vm10, %v1003_v54, %v1007_v34  ;;  %v826_v59 = vsel %vm267_vm0, 0, %v825_v15  ;;  %v936_v22 = vpack.c.b16 %v935_v6, %v935_v6  ;;  %v848_v24 = vperm.slane %v840_v7, %v2934_v18 }
 0x109   : > { %675 = vrot.lane.b32.xlu1 %v674_v40, %s2861_s26  ;;  %v1090_v40 = vshrl.u32 %v3330_v36, 16  ;;  %v1102_v31 = vperm.slane %v1077_v33, %v2906_v2  ;;  %v1105_v46 = vrot.slane %v1097_v20, 4  ;;  %v1131_v56 = vrot.slane %v1123_v16, 4 }
 0x10a   : > { %v1084_v55 = vshrl.u32 %v3340_v38, 16  ;;  %v1085_v53 = vshrl.u32 %v3344_v48, 16  ;;  %v910_v27 = vunpack.c.l.b16 %v826_v59  ;;  %v1198_v57 = vunpack.c.l.b16 %v1136_v44 }
 0x10b   : > { %v1092_v54 = vpack.i.b16 %v1091_v49, %v1090_v40  ;;  %v875_v51 = vrot.slane %v3180_v21, 4  ;;  %v1106_v37 = vsel %vm267_vm0, %v1102_v31, %v1105_v46  ;;  %v877_v35 = vrot.slane %v3296_v45, 4 }
 0x10c   : > { %v1132_v16 = vsel %vm267_vm0, %v3290_v50, %v1131_v56  ;;  %v1086_v3 = vpack.i.b16 %v1085_v53, %v1084_v55  ;;  %v911_v61 = vpack.c.b16 %v910_v27, %v910_v27  ;;  %v1103_v39 = vrot.slane %v1102_v31, 4 }
 0x10d   : > { %v3363_v10 = vperm.slane %v1092_v54, %v2906_v2  ;;  %v1114_v14 = vperm.slane %v1106_v37, %v2934_v18  ;;  %v3369_v28 = vperm.slane %v1132_v16, %v2934_v18  ;;  %v1089_v50 = vpack.i.b16 %v3334_v47, %v3330_v36 }
 0x10e   : > { %635 = vrot.lane.b32.xlu2 %v634_v5, %s2858_s23  ;;  %v930_v5 = vunpack.c.l.b16 %v848_v24  ;;  %v878_v45 = vsel %vm267_vm0, 0, %v877_v35  ;;  %v3375_v19 = vperm.slane %v1086_v3, %v2906_v2  ;;  %v1083_v23 = vpack.i.b16 %v3344_v48, %v3340_v38 }
 0x10f   : > { %v1181_v4 = vrot.slane %v3363_v10, 4  ;;  %v1104_v42 = vsel %vm267_vm0, %v1103_v39, %v1097_v20  ;;  %v1213_v25 = vunpack.c.l.b16 %v1114_v14  ;;  %v851_v6 = vrot.slane %v848_v24, 4 }
 0x110   : > { %887 = vrot.lane.b32.xlu0 %v886_v0, %s2858_s23  ;;  %v1199_v0 = vpack.c.b16 %v1198_v57, %v1198_v57  ;;  %v931_v21 = vpack.c.b16 %v930_v5, %v930_v5  ;;  %v1141_v15 = vrot.slane %v1136_v44, 4  ;;  %v945_v26 = vunpack.c.l.b16 %v878_v45 }
 0x111   : > { %892 = vrot.lane.b32.xlu1 %v891_v8, %s2861_s26  ;;  %v876_v8 = vsel %vm267_vm0, 0, %v875_v51  ;;  %v1143_v34 = vrot.slane %v3369_v28, 4  ;;  %v1154_v32 = vperm.slane %v1089_v50, %v2906_v2  ;;  %v1182_v33 = vsel %vm267_vm0, %v1181_v4, %v3375_v19 }
 0x112   : > { %v925_v30 = vunpack.c.l.b16 %v876_v8  ;;  %v3388_v7 = vperm.slane %v1104_v42, %v2934_v18  ;;  %v1214_v20 = vpack.c.b16 %v1213_v25, %v1213_v25  ;;  %v1142_v59 = vsel %vm267_vm0, 0, %v1141_v15 }
 0x113   : > { %v946_v44 = vpack.c.b16 %v945_v26, %v945_v26  ;;  %v1144_v49 = vsel %vm267_vm0, 0, %v1143_v34  ;;  %v1155_v24 = vrot.slane %v1154_v32, 4  ;;  %v1208_v55 = vunpack.c.l.b16 %v1142_v59 }
 0x114   : > { %v926_v40 = vpack.c.b16 %v925_v30, %v925_v30  ;;  %v1115_v31 = vrot.slane %v3388_v7, 4  ;;  %v1228_v53 = vunpack.c.l.b16 %v1144_v49  ;;  %v1117_v54 = vrot.slane %v1114_v14, 4 }
 0x115   : > { %v1209_v35 = vpack.c.b16 %v1208_v55, %v1208_v55  ;;  %v1183_v25 = vrot.slane %v3375_v19, 4  ;;  %v1218_v15 = vunpack.c.l.b16 %v3369_v28  ;;  %v2838_v55 = vld [vmem:[%s2904_s20 + $0x24] sm:$0xf] }
 0x116   : > { %695 = vrot.lane.b32.xlu2 %v694_v29, %s2860_s25  ;;  %v1149_v29 = vperm.slane %v1083_v23, %v2906_v2  ;;  %v1116_v51 = vsel %vm267_vm0, 0, %v1115_v31  ;;  %v1229_v16 = vpack.c.b16 %v1228_v53, %v1228_v53  ;;  %v1118_v3 = vsel %vm267_vm0, 0, %v1117_v54  ;;  %v2839_v54 = vld [vmem:[%s2904_s20 + $0x28] sm:$0xf] }
 0x117   : > { %v1223_v14 = vunpack.c.l.b16 %v1118_v3  ;;  %v2792_v53 = vrot.slane %v2838_v55, 9 }
 0x118   : > { %640 = vrot.lane.b32.xlu0 %v639_v43, %s2861_s26  ;;  %v852_v43 = vsel %vm267_vm0, 0, %v851_v6  ;;  %v1157_v46 = vrot.slane %v1149_v29, 4  ;;  %v1156_v57 = vsel %vm267_vm0, %v1155_v24, %v1149_v29 }
 0x119   : > { %937 = vrot.lane.b32.xlu1 %v936_v22, %s2859_s24  ;;  %v1188_v22 = vperm.slane %v1182_v33, %v2934_v18  ;;  %v940_v56 = vunpack.c.l.b16 %v852_v43  ;;  %v1224_v23 = vpack.c.b16 %v1223_v14, %v1223_v14  ;;  %v1219_v33 = vpack.c.b16 %v1218_v15, %v1218_v15 }
 0x11a   : > { %v1158_v5 = vsel %vm267_vm0, %v1154_v32, %v1157_v46  ;;  %v1184_v32 = vsel %vm267_vm0, %v3363_v10, %v1183_v25  ;;  %v1834_v25 = vrot.slane %v3299_v12, 5 }
 0x11b   : > { %v1193_v27 = vrot.slane %v1188_v22, 4  ;;  %v941_v37 = vpack.c.b16 %v940_v56, %v940_v56  ;;  %v1166_v8 = vperm.slane %v1158_v5, %v2934_v18 }
 0x11d   : > { %v1194_v39 = vsel %vm267_vm0, 0, %v1193_v27  ;;  %v1169_v4 = vrot.slane %v1166_v8, 4  ;;  %v1248_v10 = vunpack.c.l.b16 %v1166_v8  ;;  %v1838_v27 = vrot.slane %v2839_v54, 5 }
 0x11e   : > { %912 = vrot.lane.b32.xlu2 %v911_v61, %s2860_s25  ;;  %v3404_v61 = vperm.slane %v1156_v57, %v2934_v18 }
 0x11f   : > { %v1170_v6 = vsel %vm267_vm0, 0, %v1169_v4 }
 0x120   : > { %932 = vrot.lane.b32.xlu0 %v931_v21, %s2856_s21  ;;  %v1243_v21 = vunpack.c.l.b16 %v1194_v39  ;;  %v1167_v50 = vrot.slane %v3404_v61, 4  ;;  %v1258_v34 = vunpack.c.l.b16 %v1170_v6  ;;  %v2841_v39 = vld [vmem:[%s2904_s20 + $0x18] sm:$0xf]  ;;  %v2842_v6 = vld [vmem:[%s2904_s20 + $0x4] sm:$0xf] }
 0x121   : > { %1200 = vrot.lane.b32.xlu1 %v1199_v0, %s2857_s22  ;;  %v1203_v0 = vunpack.c.l.b16 %v1116_v51  ;;  %v1817_v15 = vrot.slane %v2842_v6, 5 }
 0x122   : > { %v1244_v30 = vpack.c.b16 %v1243_v21, %v1243_v21  ;;  %v1168_v42 = vsel %vm267_vm0, 0, %v1167_v50  ;;  %v1259_v19 = vpack.c.b16 %v1258_v34, %v1258_v34  ;;  %v1840_v34 = vrot.slane %v1838_v27, 4 }
 0x123   : > { %v1204_v45 = vpack.c.b16 %v1203_v0, %v1203_v0  ;;  %v1238_v26 = vunpack.c.l.b16 %v1168_v42  ;;  %v2791_v0 = vrot.slane %v2841_v39, 9  ;;  %v1819_v12 = vrot.slane %v1817_v15, 4 }
 0x125   : > { %v1239_v29 = vpack.c.b16 %v1238_v26, %v1238_v26 }
 0x126   : > { %927 = vrot.lane.b32.xlu2 %v926_v40, %s2861_s26  ;;  %v1192_v40 = vperm.slane %v1184_v32, %v2934_v18 }
 0x128   : > { %947 = vrot.lane.b32.xlu0 %v946_v44, %s2860_s25  ;;  %v1253_v28 = vunpack.c.l.b16 %v1192_v40  ;;  %v1195_v24 = vrot.slane %v1192_v40, 4  ;;  %v1841_v40 = vrot.slane %v3302_v58, 5  ;;  %v2844_v58 = vld [vmem:[%s2904_s20 + $0x10] sm:$0xf] }
 0x129   : > { %1215 = vrot.lane.b32.xlu1 %v1214_v20, %s2856_s21  ;;  %v1233_v20 = vunpack.c.l.b16 %v1188_v22  ;;  %v1249_v22 = vpack.c.b16 %v1248_v10, %v1248_v10 }
 0x12a   : > { %v1254_v44 = vpack.c.b16 %v1253_v28, %v1253_v28  ;;  %v1196_v46 = vsel %vm267_vm0, 0, %v1195_v24  ;;  %v2843_v28 = vld [vmem:[%s2904_s20] sm:$0xf] }
 0x12b   : > { %v1234_v59 = vpack.c.b16 %v1233_v20, %v1233_v20  ;;  %v1263_v56 = vunpack.c.l.b16 %v1196_v46  ;;  %v2845_v46 = vld [vmem:[%s2904_s20 + $0xc] sm:$0xf] }
 0x12e   : > { %942 = vrot.lane.b32.xlu2 %v941_v37, %s2862_s27  ;;  %v1264_v37 = vpack.c.b16 %v1263_v56, %v1263_v56  ;;  %v2790_v56 = vrot.slane %v2845_v46, 9 }
 0x130   : > { %1210 = vrot.lane.b32.xlu0 %v1209_v35, %s2861_s26  ;;  %v3423_v43 = vpop.permute.xlu2 %680  ;;  %v3453_v35 = vsel %vm3443_vm13, %v2792_v53, %v1838_v27 }
 0x131   : > { %1230 = vrot.lane.b32.xlu1 %v1229_v16, %s2860_s25  ;;  %v2840_v16 = vld [vmem:[%s2904_s20 + $0x1c] sm:$0xf]  ;;  %v1853_v8 = vshrl.u32 %v3453_v35, 16 }
 0x132   : > { %v1831_v3 = vrot.slane %v2840_v16, 5 }
 0x134   : > { %v3460_v14 = vsel %vm3443_vm13, %v2791_v0, %v1831_v3  ;;  %v1833_v42 = vrot.slane %v1831_v3, 4 }
 0x135   : > { %v1852_v50 = vshrl.u32 %v3460_v14, 16 }
 0x136   : > { %1205 = vrot.lane.b32.xlu2 %v1204_v45, %s2858_s23 }
 0x137   : > { %v3468_v4 = vpack.i.b16 %v1853_v8, %v1852_v50 }
 0x138   : > { %1225 = vrot.lane.b32.xlu0 %v1224_v23, %s2862_s27 }
 0x139   : > { %1245 = vrot.lane.b32.xlu1 %v1244_v30, %s2861_s26 }
 0x13e   : > { %1220 = vrot.lane.b32.xlu2 %v1219_v33, %s2859_s24  ;;  %v3490_v33 = vsel %vm3443_vm13, %v1833_v42, %v1834_v25  ;;  %v1827_v25 = vrot.slane %v3316_v13, 5 }
 0x13f   : > { %v1864_v20 = vshrl.u32 %v3490_v33, 16 }
 0x140   : > { %1240 = vrot.lane.b32.xlu0 %v1239_v29, %s2858_s23  ;;  %v3428_v49 = vpop.permute.xlu1 %645  ;;  %v1820_v29 = vrot.slane %v3313_v1, 5 }
 0x141   : > { %1260 = vrot.lane.b32.xlu1 %v1259_v19, %s2862_s27 }
 0x142   : > { %v3507_v1 = vsel %vm3443_vm13, %v1819_v12, %v1820_v29 }
 0x146   : > { %1235 = vrot.lane.b32.xlu2 %v1234_v59, %s2857_s22  ;;  %v2789_v59 = vrot.slane %v2843_v28, 9 }
 0x148   : > { %v3430_v31 = vpop.permute.xlu2 %897  ;;  %1255 = vrot.lane.b32.xlu0 %v1254_v44, %s2859_s24  ;;  %v3447_v5 = vpop.permute.xlu1 %630  ;;  %v3500_v44 = vsel %vm3443_vm13, %v1840_v34, %v1841_v40  ;;  %v3515_v55 = vsel %vm3443_vm13, %v2789_v59, %v1817_v15 }
 0x149   : > { %1307 = vrot.lane.b32.xlu1 %v3340_v38, %s2863_s28  ;;  %v1865_v24 = vshrl.u32 %v3500_v44, 16  ;;  %v1846_v27 = vshrl.u32 %v3515_v55, 16 }
 0x14a   : > { %v3472_v23 = vpop.permute.xlu0 %685 }
 0x14b   : > { %v3517_v53 = vpack.i.b16 %v1865_v24, %v1864_v20 }
 0x14e   : > { %1250 = vrot.lane.b32.xlu2 %v1249_v22, %s2856_s21  ;;  %v1824_v22 = vrot.slane %v2844_v58, 5 }
 0x150   : > { %v3439_v57 = vpop.permute.xlu2 %650  ;;  %1305 = vrot.lane.b32.xlu0 %v3262_v11, %s2863_s28  ;;  %v3474_v30 = vpop.permute.xlu1 %690  ;;  %v1826_v42 = vrot.slane %v1824_v22, 4 }
 0x151   : > { %1313 = vrot.lane.b32.xlu1 %v3239_v41, %s2863_s28 }
 0x152   : > { %v3542_v34 = vsel %vm3443_vm13, %v1826_v42, %v1827_v25 }
 0x156   : > { %1265 = vrot.lane.b32.xlu2 %v1264_v37, %s2860_s25  ;;  %v3524_v37 = vsel %vm3443_vm13, %v2790_v56, %v1824_v22 }
 0x157   : > { %v1847_v39 = vshrl.u32 %v3524_v37, 16 }
 0x158   : > { %v666_v45 = vpop.permute.xlu2 %665  ;;  %1311 = vrot.lane.b32.xlu0 %v3344_v48, %s2863_s28 }
 0x159   : > { %1319 = vrot.lane.b32.xlu1 %v3334_v47, %s2863_s28  ;;  %v3531_v8 = vpack.i.b16 %v1847_v39, %v1846_v27  ;;  %v714_v13 = vsel %vm431_vm1, %v3207_v17, %v666_v45 }
 0x15e   : > { %1309 = vrot.lane.b32.xlu2 %v3267_v9, %s2863_s28 }
 0x160   : > { %v3480_v26 = vpop.permute.xlu2 %882  ;;  %1317 = vrot.lane.b32.xlu0 %v3244_v60, %s2863_s28 }
 0x161   : > { %2342 = vrot.lane.b32.xlu1 %v3453_v35, %s2864_s29  ;;  %v951_v24 = vsel %vm431_vm1, %v3248_v63, %v3480_v26 }
 0x162   : > { %v3486_v32 = vpop.permute.xlu0 %902 }
 0x163   : > { %v3494_v19 = vpop.permute.xlu1 %907 }
 0x166   : > { %1315 = vrot.lane.b32.xlu2 %v3330_v36, %s2863_s28 }
 0x168   : > { %v636_v54 = vpop.permute.xlu2 %635  ;;  %2340 = vrot.lane.b32.xlu0 %v3490_v33, %s2864_s29 }
 0x169   : > { %2332 = vrot.lane.b32.xlu1 %v3507_v1, %s2864_s29 }
 0x16a   : > { %v918_v3 = vpop.permute.xlu0 %917 }
 0x16b   : > { %v923_v0 = vpop.permute.xlu1 %922 }
 0x16e   : > { %2338 = vrot.lane.b32.xlu2 %v3460_v14, %s2864_s29 }
 0x170   : > { %v696_v50 = vpop.permute.xlu2 %695  ;;  %2330 = vrot.lane.b32.xlu0 %v3515_v55, %s2864_s29 }
 0x171   : > { %1564 = vrot.lane.b32.xlu1 %v3239_v41, %s2864_s29 }
 0x172   : > { %v656_v6 = vpop.permute.xlu0 %655 }
 0x173   : > { %v661_v15 = vpop.permute.xlu1 %660 }
 0x176   : > { %2344 = vrot.lane.b32.xlu2 %v3500_v44, %s2864_s29 }
 0x178   : > { %v913_v12 = vpop.permute.xlu2 %912  ;;  %2336 = vrot.lane.b32.xlu0 %v3542_v34, %s2864_s29 }
 0x179   : > { %1570 = vrot.lane.b32.xlu1 %v3334_v47, %s2864_s29 }
 0x17a   : > { %v671_v41 = vpop.permute.xlu0 %670 }
 0x17b   : > { %v676_v29 = vpop.permute.xlu1 %675  ;;  %v716_v40 = vsel %vm435_vm2, %v714_v13, %v671_v41 }
 0x17c   : > { %v718_v20 = vsel %vm438_vm3, %v716_v40, %v676_v29 }
 0x17d   : > { %v720_v59 = vsel %vm441_vm4, %v718_v20, %v3423_v43 }
 0x17e   : > { %2334 = vrot.lane.b32.xlu2 %v3524_v37, %s2864_s29  ;;  %v722_v17 = vsel %vm444_vm5, %v720_v59, %v3472_v23 }
 0x17f   : > { %v724_v43 = vsel %vm447_vm6, %v722_v17, %v3474_v30  ;;  %v966_v30 = vsel %vm431_vm1, %v3158_v62, %v918_v3 }
 0x180   : > { %v928_v51 = vpop.permute.xlu2 %927  ;;  %1568 = vrot.lane.b32.xlu0 %v3244_v60, %s2864_s29  ;;  %v699_v60 = vsel %vm431_vm1, %v3224_v52, %v3447_v5  ;;  %v726_v5 = vsel %vm450_vm7, %v724_v43, %v696_v50 }
 0x181   : > { %2090 = vrot.lane.b32.xlu1 %v3453_v35, %s2863_s28 }
 0x182   : > { %v888_v47 = vpop.permute.xlu0 %887 }
 0x183   : > { %v893_v28 = vpop.permute.xlu1 %892  ;;  %v953_v23 = vsel %vm435_vm2, %v951_v24, %v888_v47 }
 0x184   : > { %v955_v63 = vsel %vm438_vm3, %v953_v23, %v893_v28 }
 0x186   : > { %1566 = vrot.lane.b32.xlu2 %v3330_v36, %s2864_s29  ;;  %v701_v36 = vsel %vm435_vm2, %v699_v60, %v636_v54  ;;  %v730_v54 = vunpack.c.l.b16 %v726_v5 }
 0x188   : > { %v943_v45 = vpop.permute.xlu2 %942  ;;  %2088 = vrot.lane.b32.xlu0 %v3490_v33, %s2863_s28 }
 0x189   : > { %1558 = vrot.lane.b32.xlu1 %v3340_v38, %s2864_s29 }
 0x18a   : > { %v641_v58 = vpop.permute.xlu0 %640 }
 0x18b   : > { %v703_v22 = vsel %vm438_vm3, %v701_v36, %v641_v58  ;;  %v938_v46 = vpop.permute.xlu1 %937 }
 0x18c   : > { %v705_v52 = vsel %vm441_vm4, %v703_v22, %v3428_v49  ;;  %v957_v49 = vsel %vm441_vm4, %v955_v63, %v3430_v31 }
 0x18d   : > { %v707_v38 = vsel %vm444_vm5, %v705_v52, %v3439_v57  ;;  %v968_v57 = vsel %vm435_vm2, %v966_v30, %v923_v0  ;;  %v959_v3 = vsel %vm444_vm5, %v957_v49, %v3486_v32 }
 0x18e   : > { %v709_v26 = vsel %vm447_vm6, %v707_v38, %v656_v6  ;;  %2086 = vrot.lane.b32.xlu2 %v3460_v14, %s2863_s28  ;;  %v970_v62 = vsel %vm438_vm3, %v968_v57, %v928_v51 }
 0x18f   : > { %v711_v56 = vsel %vm450_vm7, %v709_v26, %v661_v15 }
 0x190   : > { %v729_v27 = vunpack.c.l.b16 %v711_v56  ;;  %1556 = vrot.lane.b32.xlu0 %v3262_v11, %s2864_s29  ;;  %v1206_v39 = vpop.permute.xlu2 %1205  ;;  %v961_v11 = vsel %vm447_vm6, %v959_v3, %v3494_v19 }
 0x191   : > { %2078 = vrot.lane.b32.xlu1 %v3515_v55, %s2863_s28  ;;  %v963_v32 = vsel %vm450_vm7, %v961_v11, %v913_v12 }
 0x192   : > { %v731_v50 = vpack.c.b16 %v730_v54, %v729_v27  ;;  %v933_v42 = vpop.permute.xlu0 %932  ;;  %v981_v40 = vunpack.c.l.b16 %v963_v32 }
 0x193   : > { %v1201_v25 = vpop.permute.xlu1 %1200  ;;  %v972_v31 = vsel %vm441_vm4, %v970_v62, %v933_v42 }
 0x194   : > { %v732_v6 = vrot.slane %v731_v50, 6  ;;  %v974_v0 = vsel %vm444_vm5, %v972_v31, %v938_v46 }
 0x195   : > { %v976_v41 = vsel %vm447_vm6, %v974_v0, %v943_v45  ;;  %v1269_v45 = vsel %vm431_vm1, %v3388_v7, %v1201_v25 }
 0x196   : > { %734 = vst [vmem:[#allocation2] sm:$0xcc] %v732_v6  ;;  %2092 = vrot.lane.b32.xlu2 %v3500_v44, %s2863_s28  ;;  %v1271_v60 = vsel %vm435_vm2, %v1269_v45, %v1206_v39 }
 0x198   : > { %1562 = vrot.lane.b32.xlu0 %v3344_v48, %s2864_s29  ;;  %v1221_v15 = vpop.permute.xlu2 %1220 }
 0x199   : > { %2084 = vrot.lane.b32.xlu1 %v3542_v34, %s2863_s28 }
 0x19a   : > { %v948_v29 = vpop.permute.xlu0 %947 }
 0x19b   : > { %v978_v13 = vsel %vm450_vm7, %v976_v41, %v948_v29  ;;  %v1216_v19 = vpop.permute.xlu1 %1215 }
 0x19c   : > { %v982_v51 = vunpack.c.l.b16 %v978_v13 }
 0x19e   : > { %v983_v20 = vpack.c.b16 %v982_v51, %v981_v40  ;;  %1560 = vrot.lane.b32.xlu2 %v3267_v9, %s2864_s29 }
 0x1a0   : > { %985 = vst [vmem:[#allocation2 + $0x8] sm:$0x33] %v983_v20  ;;  %2082 = vrot.lane.b32.xlu0 %v3524_v37, %s2863_s28  ;;  %v1236_v48 = vpop.permute.xlu2 %1235 }
 0x1a1   : > { %v1284_v36 = vsel %vm431_vm1, %v3404_v61, %v1236_v48 }
 0x1a2   : > { %v1211_v47 = vpop.permute.xlu0 %1210 }
 0x1a3   : > { %v1231_v28 = vpop.permute.xlu1 %1230  ;;  %v1273_v9 = vsel %vm438_vm3, %v1271_v60, %v1211_v47 }
 0x1a4   : > { %v1275_v58 = vsel %vm441_vm4, %v1273_v9, %v1216_v19 }
 0x1a5   : > { %v1277_v46 = vsel %vm444_vm5, %v1275_v58, %v1221_v15 }
 0x1a6   : > { %2080 = vrot.lane.b32.xlu2 %v3507_v1, %s2863_s28 }
 0x1a8   : > { %v1251_v12 = vpop.permute.xlu2 %1250 }
 0x1aa   : > { %v1226_v59 = vpop.permute.xlu0 %1225 }
 0x1ab   : > { %v1246_v17 = vpop.permute.xlu1 %1245  ;;  %v1279_v7 = vsel %vm447_vm6, %v1277_v46, %v1226_v59 }
 0x1ac   : > { %v1281_v26 = vsel %vm450_vm7, %v1279_v7, %v1231_v28 }
 0x1ad   : > { %v1299_v49 = vunpack.c.l.b16 %v1281_v26 }
 0x1b0   : > { %v1266_v24 = vpop.permute.xlu2 %1265 }
 0x1b2   : > { %v1241_v43 = vpop.permute.xlu0 %1240 }
 0x1b3   : > { %v1261_v23 = vpop.permute.xlu1 %1260  ;;  %v1286_v22 = vsel %vm435_vm2, %v1284_v36, %v1241_v43 }
 0x1b4   : > { %v1288_v52 = vsel %vm438_vm3, %v1286_v22, %v1246_v17 }
 0x1b5   : > { %v1290_v63 = vsel %vm441_vm4, %v1288_v52, %v1251_v12 }
 0x1b8   : > { %v1310_v5 = vpop.permute.xlu2 %1309 }
 0x1b9   : > { %v1325_v50 = vshrl.u32 %v1310_v5, 16 }
 0x1ba   : > { %v1256_v38 = vpop.permute.xlu0 %1255 }
 0x1bb   : > { %v1292_v61 = vsel %vm444_vm5, %v1290_v63, %v1256_v38  ;;  %v1308_v30 = vpop.permute.xlu1 %1307 }
 0x1bc   : > { %v1294_v56 = vsel %vm447_vm6, %v1292_v61, %v1261_v23  ;;  %v1336_v32 = vshrl.u32 %v1308_v30, 16 }
 0x1bd   : > { %v1296_v54 = vsel %vm450_vm7, %v1294_v56, %v1266_v24 }
 0x1be   : > { %v1300_v27 = vunpack.c.l.b16 %v1296_v54 }
 0x1c0   : > { %v1301_v39 = vpack.c.b16 %v1300_v27, %v1299_v49  ;;  %v1316_v57 = vpop.permute.xlu2 %1315 }
 0x1c1   : > { %v1342_v0 = vshrl.u32 %v1316_v57, 16 }
 0x1c2   : > { %v1302_v42 = vrot.slane %v1301_v39, 6  ;;  %v1306_v62 = vpop.permute.xlu0 %1305 }
 0x1c3   : > { %v1323_v3 = vpack.i.b16 %v1310_v5, %v1306_v62  ;;  %v1324_v25 = vshrl.u32 %v1306_v62, 16  ;;  %v1314_v6 = vpop.permute.xlu1 %1313 }
 0x1c4   : > { %1304 = vst [vmem:[#allocation2 + $0x8] sm:$0xcc] %v1302_v42  ;;  %v1330_v36 = vshrl.u32 %v1314_v6, 16 }
 0x1c5   : > { %v1326_v31 = vpack.i.b16 %v1325_v50, %v1324_v25  ;;  %v1349_v60 = vperm.slane %v1323_v3, %v2906_v2 }
 0x1c7   : > { %v1375_v22 = vperm.slane %v1326_v31, %v2906_v2  ;;  %v1357_v38 = vrot.slane %v1349_v60, 4 }
 0x1c8   : > { %v2339_v11 = vpop.permute.xlu2 %2338 }
 0x1c9   : > { %v2355_v62 = vshrl.u32 %v2339_v11, 16 }
 0x1ca   : > { %v1312_v15 = vpop.permute.xlu0 %1311 }
 0x1cb   : > { %v1335_v41 = vpack.i.b16 %v1312_v15, %v1308_v30  ;;  %v1337_v29 = vshrl.u32 %v1312_v15, 16  ;;  %v1320_v13 = vpop.permute.xlu1 %1319  ;;  %v1383_v30 = vrot.slane %v1375_v22, 4 }
 0x1cc   : > { %v1341_v19 = vpack.i.b16 %v1320_v13, %v1316_v57  ;;  %v1343_v40 = vshrl.u32 %v1320_v13, 16 }
 0x1cd   : > { %v1338_v51 = vpack.i.b16 %v1337_v29, %v1336_v32  ;;  %v1401_v20 = vperm.slane %v1335_v41, %v2906_v2 }
 0x1ce   : > { %v1344_v48 = vpack.i.b16 %v1343_v40, %v1342_v0  ;;  %v1406_v47 = vperm.slane %v1341_v19, %v2906_v2 }
 0x1cf   : > { %v1409_v28 = vrot.slane %v1401_v20, 4  ;;  %v1427_v12 = vperm.slane %v1338_v51, %v2906_v2 }
 0x1d0   : > { %v1407_v59 = vrot.slane %v1406_v47, 4  ;;  %v1432_v17 = vperm.slane %v1344_v48, %v2906_v2  ;;  %v2345_v45 = vpop.permute.xlu2 %2344 }
 0x1d1   : > { %v1435_v24 = vrot.slane %v1427_v12, 4  ;;  %v3644_v9 = vsel %vm267_vm0, %v1406_v47, %v1409_v28  ;;  %v2368_v29 = vshrl.u32 %v2345_v45, 16 }
 0x1d2   : > { %v1433_v43 = vrot.slane %v1432_v17, 4  ;;  %v1318_v23 = vpop.permute.xlu0 %1317  ;;  %v3647_v58 = vsel %vm267_vm0, %v1407_v59, %v1401_v20 }
 0x1d3   : > { %v3651_v46 = vsel %vm267_vm0, %v1432_v17, %v1435_v24  ;;  %v1329_v52 = vpack.i.b16 %v1318_v23, %v1314_v6  ;;  %v1331_v7 = vshrl.u32 %v1318_v23, 16  ;;  %v2343_v5 = vpop.permute.xlu1 %2342 }
 0x1d4   : > { %v3654_v63 = vsel %vm267_vm0, %v1433_v43, %v1427_v12  ;;  %v2356_v3 = vshrl.u32 %v2343_v5, 16  ;;  %v2354_v31 = vpack.i.b16 %v2343_v5, %v2339_v11 }
 0x1d5   : > { %v1332_v26 = vpack.i.b16 %v1331_v7, %v1330_v36  ;;  %v1354_v61 = vperm.slane %v1329_v52, %v2906_v2 }
 0x1d6   : > { %v2357_v0 = vpack.i.b16 %v2356_v3, %v2355_v62  ;;  %v2379_v32 = vperm.slane %v2354_v31, %v2906_v2 }
 0x1d7   : > { %v1355_v56 = vrot.slane %v1354_v61, 4  ;;  %v3658_v54 = vsel %vm267_vm0, %v1354_v61, %v1357_v38  ;;  %v1380_v49 = vperm.slane %v1332_v26, %v2906_v2 }
 0x1d8   : > { %v2335_v27 = vpop.permute.xlu2 %2334  ;;  %v2405_v40 = vperm.slane %v2357_v0, %v2906_v2  ;;  %v2380_v47 = vrot.slane %v2379_v32, 4 }
 0x1d9   : > { %v1381_v39 = vrot.slane %v1380_v49, 4  ;;  %v3662_v57 = vsel %vm267_vm0, %v1380_v49, %v1383_v30  ;;  %v3665_v42 = vsel %vm267_vm0, %v1355_v56, %v1349_v60  ;;  %v2350_v41 = vshrl.u32 %v2335_v27, 16 }
 0x1da   : > { %v2341_v50 = vpop.permute.xlu0 %2340  ;;  %v2406_v17 = vrot.slane %v2405_v40, 4 }
 0x1db   : > { %v2333_v25 = vpop.permute.xlu1 %2332  ;;  %v3668_v6 = vsel %vm267_vm0, %v1381_v39, %v1375_v22  ;;  %v2367_v13 = vshrl.u32 %v2341_v50, 16  ;;  %v2366_v28 = vpack.i.b16 %v2345_v45, %v2341_v50 }
 0x1dc   : > { %v2361_v38 = vshrl.u32 %v2333_v25, 16 }
 0x1dd   : > { %v2369_v59 = vpack.i.b16 %v2368_v29, %v2367_v13  ;;  %v2431_v43 = vperm.slane %v2366_v28, %v2906_v2 }
 0x1df   : > { %v2457_v45 = vperm.slane %v2369_v59, %v2906_v2 }
 0x1e0   : > { %v3670_v15 = vpop.permute.xlu2 %1566 }
 0x1e1   : > { %v2458_v3 = vrot.slane %v2457_v45, 4 }
 0x1e2   : > { %v2331_v19 = vpop.permute.xlu0 %2330 }
 0x1e3   : > { %v2348_v51 = vpack.i.b16 %v2335_v27, %v2331_v19  ;;  %v2349_v20 = vshrl.u32 %v2331_v19, 16  ;;  %v3674_v48 = vpop.permute.xlu1 %1564  ;;  %v2432_v27 = vrot.slane %v2431_v43, 4 }
 0x1e5   : > { %v2351_v12 = vpack.i.b16 %v2350_v41, %v2349_v20  ;;  %v2374_v11 = vperm.slane %v2348_v51, %v2906_v2 }
 0x1e7   : > { %v2381_v60 = vsel %vm267_vm0, %v2380_v47, %v2374_v11  ;;  %v2400_v24 = vperm.slane %v2351_v12, %v2906_v2  ;;  %v2382_v0 = vrot.slane %v2374_v11, 4 }
 0x1e8   : > { %v3680_v36 = vperm.slane %v2381_v60, %v2934_v18  ;;  %v3684_v22 = vpop.permute.xlu2 %2086 }
 0x1e9   : > { %v2407_v23 = vsel %vm267_vm0, %v2406_v17, %v2400_v24  ;;  %v2408_v51 = vrot.slane %v2400_v24, 4  ;;  %v2383_v17 = vsel %vm267_vm0, %v2379_v32, %v2382_v0 }
 0x1ea   : > { %v2337_v52 = vpop.permute.xlu0 %2336  ;;  %v2413_v7 = vperm.slane %v2407_v23, %v2934_v18  ;;  %v2392_v5 = vrot.slane %v3680_v36, 4  ;;  %v3710_v24 = vperm.slane %v2383_v17, %v2934_v18 }
 0x1eb   : > { %v2360_v26 = vpack.i.b16 %v2337_v52, %v2333_v25  ;;  %v2362_v61 = vshrl.u32 %v2337_v52, 16  ;;  %v3689_v30 = vpop.permute.xlu1 %1570 }
 0x1ec   : > { %v2475_v56 = vunpack.c.l.b16 %v2413_v7  ;;  %v2393_v49 = vsel %vm267_vm0, 0, %v2392_v5  ;;  %v2418_v59 = vrot.slane %v2413_v7, 4  ;;  %v2490_v0 = vunpack.c.l.b16 %v3710_v24 }
 0x1ed   : > { %v2363_v39 = vpack.i.b16 %v2362_v61, %v2361_v38  ;;  %v2426_v50 = vperm.slane %v2360_v26, %v2906_v2  ;;  %v2480_v62 = vunpack.c.l.b16 %v2393_v49  ;;  %v2409_v26 = vsel %vm267_vm0, %v2405_v40, %v2408_v51 }
 0x1ee   : > { %v2476_v31 = vpack.c.b16 %v2475_v56, %v2475_v56  ;;  %v2491_v17 = vpack.c.b16 %v2490_v0, %v2490_v0 }
 0x1ef   : > { %v2433_v41 = vsel %vm267_vm0, %v2432_v27, %v2426_v50  ;;  %v2452_v29 = vperm.slane %v2363_v39, %v2906_v2  ;;  %v2481_v13 = vpack.c.b16 %v2480_v62, %v2480_v62  ;;  %v2434_v61 = vrot.slane %v2426_v50, 4 }
 0x1f0   : > { %2477 = vrot.lane.b32.xlu2 %v2476_v31, %s2857_s22  ;;  %v3697_v25 = vperm.slane %v2433_v41, %v2934_v18  ;;  %v3705_v11 = vpop.permute.xlu2 %2092  ;;  %v2419_v27 = vsel %vm267_vm0, 0, %v2418_v59  ;;  %v3720_v31 = vperm.slane %v2409_v26, %v2934_v18 }
 0x1f1   : > { %2482 = vrot.lane.b32.xlu1 %v2481_v13, %s2858_s23  ;;  %v2459_v19 = vsel %vm267_vm0, %v2458_v3, %v2452_v29  ;;  %v2460_v7 = vrot.slane %v2452_v29, 4  ;;  %v2485_v3 = vunpack.c.l.b16 %v2419_v27  ;;  %v2435_v41 = vsel %vm267_vm0, %v2431_v43, %v2434_v61 }
 0x1f2   : > { %v1569_v20 = vpop.permute.xlu0 %1568  ;;  %v2465_v47 = vperm.slane %v2459_v19, %v2934_v18  ;;  %v2444_v28 = vrot.slane %v3697_v25, 4  ;;  %v1581_v13 = vshrl.u32 %v3674_v48, 16  ;;  %v1593_v43 = vshrl.u32 %v3670_v15, 16 }
 0x1f3   : > { %v3703_v12 = vpop.permute.xlu1 %2090  ;;  %v1582_v40 = vshrl.u32 %v1569_v20, 16  ;;  %v2461_v29 = vsel %vm267_vm0, %v2457_v45, %v2460_v7  ;;  %v2486_v51 = vpack.c.b16 %v2485_v3, %v2485_v3  ;;  %v1594_v45 = vshrl.u32 %v3689_v30, 16 }
 0x1f4   : > { %v2510_v60 = vunpack.c.l.b16 %v2465_v47  ;;  %v2445_v23 = vsel %vm267_vm0, 0, %v2444_v28  ;;  %v2470_v5 = vrot.slane %v2465_v47, 4  ;;  %v2495_v47 = vunpack.c.l.b16 %v3720_v31 }
 0x1f5   : > { %v2515_v52 = vunpack.c.l.b16 %v2445_v23  ;;  %v3731_v28 = vperm.slane %v2435_v41, %v2934_v18  ;;  %v1583_v59 = vpack.i.b16 %v1582_v40, %v1581_v13  ;;  %v2116_v7 = vshrl.u32 %v3705_v11, 16 }
 0x1f6   : > { %v2511_v38 = vpack.c.b16 %v2510_v60, %v2510_v60  ;;  %v2471_v49 = vsel %vm267_vm0, 0, %v2470_v5  ;;  %v3734_v60 = vperm.slane %v2461_v29, %v2934_v18 }
 0x1f7   : > { %v2516_v56 = vpack.c.b16 %v2515_v52, %v2515_v52  ;;  %v2520_v32 = vunpack.c.l.b16 %v2471_v49  ;;  %v1580_v52 = vpack.i.b16 %v1569_v20, %v3674_v48  ;;  %v2525_v26 = vunpack.c.l.b16 %v3731_v28 }
 0x1f8   : > { %2512 = vrot.lane.b32.xlu0 %v2511_v38, %s2857_s22  ;;  %v1561_v19 = vpop.permute.xlu2 %1560  ;;  %v2496_v38 = vpack.c.b16 %v2495_v47, %v2495_v47  ;;  %v1631_v61 = vperm.slane %v1583_v59, %v2906_v2  ;;  %v2530_v27 = vunpack.c.l.b16 %v3734_v60  ;;  %v2103_v47 = vshrl.u32 %v3684_v22, 16 }
 0x1f9   : > { %2517 = vrot.lane.b32.xlu2 %v2516_v56, %s2858_s23  ;;  %v2521_v62 = vpack.c.b16 %v2520_v32, %v2520_v32  ;;  %v1576_v23 = vshrl.u32 %v1561_v19, 16  ;;  %v3750_v20 = vperm.slane %v1580_v52, %v2906_v2  ;;  %v2526_v40 = vpack.c.b16 %v2525_v26, %v2525_v26 }
 0x1fa   : > { %v3717_v39 = vpop.permute.xlu0 %2088  ;;  %v1632_v0 = vrot.slane %v1631_v61, 4  ;;  %v2531_v29 = vpack.c.b16 %v2530_v27, %v2530_v27 }
 0x1fb   : > { %v3722_v50 = vpop.permute.xlu1 %1558  ;;  %2522 = vrot.lane.b32.xlu1 %v2521_v62, %s2861_s26  ;;  %v2115_v32 = vshrl.u32 %v3717_v39, 16  ;;  %v1595_v62 = vpack.i.b16 %v1594_v45, %v1593_v43 }
 0x1fc   : > { %v1587_v26 = vshrl.u32 %v3722_v50, 16 }
 0x1fd   : > { %v2117_v59 = vpack.i.b16 %v2116_v7, %v2115_v32 }
 0x1ff   : > { %v3777_v32 = vperm.slane %v2117_v59, %v2906_v2 }
 0x200   : > { %2487 = vrot.lane.b32.xlu0 %v2486_v51, %s2861_s26  ;;  %v2081_v13 = vpop.permute.xlu2 %2080  ;;  %v1592_v51 = vpack.i.b16 %v3689_v30, %v3670_v15  ;;  %v2104_v15 = vshrl.u32 %v3703_v12, 16 }
 0x201   : > { %2492 = vrot.lane.b32.xlu2 %v2491_v17, %s2856_s21  ;;  %v2109_v52 = vshrl.u32 %v2081_v13, 16 }
 0x202   : > { %v1557_v5 = vpop.permute.xlu0 %1556 }
 0x203   : > { %v1575_v56 = vshrl.u32 %v1557_v5, 16  ;;  %v3743_v49 = vpop.permute.xlu1 %2078  ;;  %2497 = vrot.lane.b32.xlu1 %v2496_v38, %s2859_s24  ;;  %v1574_v3 = vpack.i.b16 %v1561_v19, %v1557_v5  ;;  %v3758_v19 = vperm.slane %v1595_v62, %v2906_v2  ;;  %v2114_v38 = vpack.i.b16 %v3705_v11, %v3717_v39 }
 0x205   : > { %v1577_v48 = vpack.i.b16 %v1576_v23, %v1575_v56  ;;  %v3761_v17 = vperm.slane %v1574_v3, %v2906_v2  ;;  %v1606_v23 = vrot.slane %v3750_v20, 4  ;;  %v3788_v59 = vperm.slane %v2114_v38, %v2906_v2 }
 0x207   : > { %v1626_v41 = vperm.slane %v1577_v48, %v2906_v2  ;;  %v1607_v11 = vsel %vm267_vm0, %v1606_v23, %v3761_v17 }
 0x208   : > { %2527 = vrot.lane.b32.xlu0 %v2526_v40, %s2856_s21  ;;  %v3782_v40 = vperm.slane %v1592_v51, %v2906_v2 }
 0x209   : > { %v1634_v43 = vrot.slane %v1626_v41, 4  ;;  %2532 = vrot.lane.b32.xlu2 %v2531_v29, %s2859_s24  ;;  %v1633_v45 = vsel %vm267_vm0, %v1632_v0, %v1626_v41  ;;  %v2105_v41 = vpack.i.b16 %v2104_v15, %v2103_v47  ;;  %v2102_v15 = vpack.i.b16 %v3703_v12, %v3684_v22 }
 0x20a   : > { %v1563_v30 = vpop.permute.xlu0 %1562  ;;  %v3768_v5 = vperm.slane %v1633_v45, %v2934_v18  ;;  %v2206_v45 = vrot.slane %v3777_v32, 4  ;;  %v1658_v47 = vrot.slane %v3782_v40, 4  ;;  %v2097_v22 = vshrl.u32 %v3743_v49, 16 }
 0x20b   : > { %v1588_v56 = vshrl.u32 %v1563_v30, 16  ;;  %v2085_v27 = vpop.permute.xlu1 %2084  ;;  %v3774_v7 = vsel %vm267_vm0, %v1631_v61, %v1634_v43  ;;  %v1586_v62 = vpack.i.b16 %v1563_v30, %v3722_v50  ;;  %v1684_v43 = vrot.slane %v3758_v19, 4 }
 0x20c   : > { %v2110_v3 = vshrl.u32 %v2085_v27, 16  ;;  %v1701_v48 = vunpack.c.l.b16 %v3768_v5  ;;  %v2108_v0 = vpack.i.b16 %v2085_v27, %v2081_v13  ;;  %v3802_v13 = vperm.slane %v1607_v11, %v2934_v18 }
 0x20d   : > { %v1589_v39 = vpack.i.b16 %v1588_v56, %v1587_v26  ;;  %v3795_v51 = vperm.slane %v1586_v62, %v2906_v2  ;;  %v2153_v38 = vperm.slane %v2105_v41, %v2906_v2  ;;  %v2394_v62 = vrot.slane %v3710_v24, 4 }
 0x20e   : > { %v2111_v29 = vpack.i.b16 %v2110_v3, %v2109_v52  ;;  %v1702_v61 = vpack.c.b16 %v1701_v48, %v1701_v48  ;;  %v3808_v30 = vperm.slane %v2108_v0, %v2906_v2  ;;  %v2180_v3 = vrot.slane %v3788_v59, 4 }
 0x20f   : > { %v3791_v50 = vperm.slane %v1589_v39, %v2906_v2  ;;  %v1659_v11 = vsel %vm267_vm0, %v1658_v47, %v3795_v51  ;;  %v1618_v41 = vrot.slane %v3802_v13, 4 }
 0x210   : > { %v3798_v23 = vperm.slane %v2111_v29, %v2906_v2  ;;  %1703 = vrot.lane.b32.xlu0 %v1702_v61, %s2857_s22  ;;  %v2181_v24 = vsel %vm267_vm0, %v2180_v3, %v3808_v30 }
 0x211   : > { %v1685_v52 = vsel %vm267_vm0, %v1684_v43, %v3791_v50  ;;  %v3833_v43 = vperm.slane %v2102_v15, %v2906_v2  ;;  %v1619_v3 = vsel %vm267_vm0, 0, %v1618_v41  ;;  %v3846_v15 = vperm.slane %v2181_v24, %v2934_v18 }
 0x212   : > { %v2083_v26 = vpop.permute.xlu0 %2082  ;;  %v3814_v56 = vperm.slane %v1685_v52, %v2934_v18  ;;  %v2207_v27 = vsel %vm267_vm0, %v2206_v45, %v3798_v23  ;;  %v2154_v45 = vrot.slane %v2153_v38, 4  ;;  %v2208_v21 = vrot.slane %v3798_v23, 4 }
 0x213   : > { %v2098_v12 = vshrl.u32 %v2083_v26, 16  ;;  %v3822_v48 = vperm.slane %v2207_v27, %v2934_v18  ;;  %v2096_v39 = vpack.i.b16 %v2083_v26, %v3743_v49  ;;  %v2395_v49 = vsel %vm267_vm0, 0, %v2394_v62 }
 0x214   : > { %v1736_v0 = vunpack.c.l.b16 %v3814_v56  ;;  %v3838_v26 = vperm.slane %v1659_v11, %v2934_v18  ;;  %v2500_v62 = vunpack.c.l.b16 %v2395_v49 }
 0x215   : > { %v2099_v29 = vpack.i.b16 %v2098_v12, %v2097_v22  ;;  %v2258_v61 = vunpack.c.l.b16 %v3822_v48  ;;  %v3841_v16 = vperm.slane %v2096_v39, %v2906_v2  ;;  %v2128_v12 = vrot.slane %v3833_v43, 4 }
 0x216   : > { %v1737_v52 = vpack.c.b16 %v1736_v0, %v1736_v0  ;;  %v1706_v0 = vunpack.c.l.b16 %v1619_v3  ;;  %v1670_v39 = vrot.slane %v3838_v26, 4 }
 0x217   : > { %v2148_v27 = vperm.slane %v2099_v29, %v2906_v2  ;;  %v2259_v47 = vpack.c.b16 %v2258_v61, %v2258_v61  ;;  %v2446_v29 = vrot.slane %v3731_v28, 4  ;;  %v2129_v41 = vsel %vm267_vm0, %v2128_v12, %v3841_v16 }
 0x218   : > { %1738 = vrot.lane.b32.xlu1 %v1737_v52, %s2857_s22  ;;  %v2192_v61 = vrot.slane %v3846_v15, 4  ;;  %v2501_v52 = vpack.c.b16 %v2500_v62, %v2500_v62  ;;  %v1707_v49 = vpack.c.b16 %v1706_v0, %v1706_v0  ;;  %v3864_v10 = vperm.slane %v2129_v41, %v2934_v18 }
 0x219   : > { %2260 = vrot.lane.b32.xlu0 %v2259_v47, %s2857_s22  ;;  %v2155_v22 = vsel %vm267_vm0, %v2154_v45, %v2148_v27  ;;  %v1686_v45 = vrot.slane %v3791_v50, 4  ;;  %v2447_v3 = vsel %vm267_vm0, 0, %v2446_v29  ;;  %v2156_v28 = vrot.slane %v2148_v27, 4 }
 0x21a   : > { %v3852_v11 = vperm.slane %v2155_v22, %v2934_v18  ;;  %v1671_v22 = vsel %vm267_vm0, 0, %v1670_v39  ;;  %v2193_v12 = vsel %vm267_vm0, 0, %v2192_v61  ;;  %v2535_v0 = vunpack.c.l.b16 %v2447_v3 }
 0x21b   : > { %v3873_v50 = vsel %vm267_vm0, %v3758_v19, %v1686_v45  ;;  %v1741_v62 = vunpack.c.l.b16 %v1671_v22  ;;  %v2263_v39 = vunpack.c.l.b16 %v2193_v12  ;;  %v2420_v29 = vrot.slane %v3720_v31, 4 }
 0x21c   : > { %v2223_v24 = vunpack.c.l.b16 %v3852_v11  ;;  %v2140_v27 = vrot.slane %v3864_v10, 4  ;;  %v3878_v41 = vsel %vm267_vm0, %v2153_v38, %v2156_v28  ;;  %v2536_v61 = vpack.c.b16 %v2535_v0, %v2535_v0 }
 0x21d   : > { %v1742_v23 = vpack.c.b16 %v1741_v62, %v1741_v62  ;;  %v2421_v19 = vsel %vm267_vm0, 0, %v2420_v29  ;;  %v4331_v31 = vpack.i.b16 %v3453_v35, %v3460_v14  ;;  %v4332_v35 = vpack.i.b16 %v3500_v44, %v3490_v33 }
 0x21e   : > { %v2224_v47 = vpack.c.b16 %v2223_v24, %v2223_v24  ;;  %v3882_v24 = vsel %vm267_vm0, %v3777_v32, %v2208_v21  ;;  %v2141_v45 = vsel %vm267_vm0, 0, %v2140_v27  ;;  %v3900_v21 = vperm.slane %v3468_v4, %v2906_v2 }
 0x21f   : > { %v3894_v38 = vperm.slane %v4331_v31, %v2906_v2  ;;  %v2505_v32 = vunpack.c.l.b16 %v2421_v19  ;;  %v3909_v14 = vperm.slane %v4332_v35, %v2906_v2  ;;  %v2472_v3 = vrot.slane %v3734_v60, 4 }
 0x220   : > { %2502 = vrot.lane.b32.xlu1 %v2501_v52, %s2862_s27  ;;  %2225 = vrot.lane.b32.xlu2 %v2224_v47, %s2857_s22  ;;  %v2264_v52 = vpack.c.b16 %v2263_v39, %v2263_v39  ;;  %v3888_v47 = vperm.slane %v3668_v6, %v2934_v18  ;;  %v1857_v6 = vpack.i.b16 %v3542_v34, %v3507_v1  ;;  %v1696_v62 = vrot.slane %v3814_v56, 4 }
 0x221   : > { %1708 = vrot.lane.b32.xlu0 %v1707_v49, %s2858_s23  ;;  %v2228_v49 = vunpack.c.l.b16 %v2141_v45  ;;  %v1877_v4 = vrot.slane %v3894_v38, 4  ;;  %v4333_v28 = vpack.i.b16 %v3524_v37, %v3515_v55  ;;  %v1858_v0 = vshrl.u32 %v3507_v1, 16 }
 0x222   : > { %v1450_v22 = vunpack.c.l.b16 %v3888_v47  ;;  %v1859_v33 = vshrl.u32 %v3542_v34, 16  ;;  %v3925_v44 = vperm.slane %v3531_v8, %v2906_v2  ;;  %v1903_v60 = vrot.slane %v3900_v21, 4 }
 0x223   : > { %v3918_v12 = vperm.slane %v4333_v28, %v2906_v2  ;;  %v2506_v39 = vpack.c.b16 %v2505_v32, %v2505_v32  ;;  %v2229_v29 = vpack.c.b16 %v2228_v49, %v2228_v49  ;;  %v3930_v27 = vperm.slane %v3654_v63, %v2934_v18 }
 0x224   : > { %v3933_v55 = vperm.slane %v1857_v6, %v2906_v2  ;;  %v1929_v37 = vrot.slane %v3909_v14, 4  ;;  %v1451_v1 = vpack.c.b16 %v1450_v22, %v1450_v22  ;;  %v2473_v34 = vsel %vm267_vm0, 0, %v2472_v3 }
 0x225   : > { %v1697_v8 = vsel %vm267_vm0, 0, %v1696_v62  ;;  %v1878_v56 = vsel %vm267_vm0, %v1877_v4, %v3918_v12  ;;  %v3944_v63 = vperm.slane %v3517_v53, %v2906_v2  ;;  %v2540_v19 = vunpack.c.l.b16 %v2473_v34 }
 0x226   : > { %v1746_v45 = vunpack.c.l.b16 %v1697_v8  ;;  %v1644_v31 = vrot.slane %v3768_v5, 4  ;;  %v1930_v32 = vsel %vm267_vm0, %v1929_v37, %v3933_v55  ;;  %v2166_v53 = vrot.slane %v3852_v11, 4 }
 0x227   : > { %v1955_v35 = vrot.slane %v3944_v63, 4  ;;  %v2541_v3 = vpack.c.b16 %v2540_v19, %v2540_v19  ;;  %v3968_v11 = vperm.slane %v3647_v58, %v2934_v18  ;;  %v3979_v34 = vperm.slane %v1878_v56, %v2934_v18 }
 0x228   : > { %1743 = vrot.lane.b32.xlu1 %v1742_v23, %s2858_s23  ;;  %2537 = vrot.lane.b32.xlu2 %v2536_v61, %s2862_s27  ;;  %v1860_v23 = vpack.i.b16 %v1859_v33, %v1858_v0  ;;  %v1904_v61 = vsel %vm267_vm0, %v1903_v60, %v3925_v44  ;;  %v1747_v4 = vpack.c.b16 %v1746_v45, %v1746_v45  ;;  %v1645_v28 = vsel %vm267_vm0, 0, %v1644_v31 }
 0x229   : > { %2265 = vrot.lane.b32.xlu0 %v2264_v52, %s2858_s23  ;;  %v1485_v52 = vunpack.c.l.b16 %v3930_v27  ;;  %v3954_v49 = vperm.slane %v1904_v61, %v2934_v18  ;;  %v2167_v62 = vsel %vm267_vm0, 0, %v2166_v53  ;;  %v1711_v0 = vunpack.c.l.b16 %v1645_v28 }
 0x22a   : > { %v3958_v6 = vperm.slane %v1860_v23, %v2906_v2  ;;  %v2233_v33 = vunpack.c.l.b16 %v2167_v62  ;;  %v2218_v60 = vrot.slane %v3822_v48, 4  ;;  %v1419_v37 = vrot.slane %v3968_v11, 4 }
 0x22b   : > { %v1486_v22 = vpack.c.b16 %v1485_v52, %v1485_v52  ;;  %v1972_v5 = vunpack.c.l.b16 %v3954_v49  ;;  %v1608_v58 = vrot.slane %v3761_v17, 4  ;;  %v3985_v61 = vperm.slane %v3665_v42, %v2934_v18 }
 0x22c   : > { %v1956_v2 = vsel %vm267_vm0, %v1955_v35, %v3958_v6  ;;  %v2234_v8 = vpack.c.b16 %v2233_v33, %v2233_v33  ;;  %v2219_v23 = vsel %vm267_vm0, 0, %v2218_v60  ;;  %v1420_v52 = vsel %vm267_vm0, 0, %v1419_v37 }
 0x22d   : > { %v2268_v56 = vunpack.c.l.b16 %v2219_v23  ;;  %v1889_v17 = vrot.slane %v3979_v34, 4  ;;  %v1490_v19 = vunpack.c.l.b16 %v1420_v52  ;;  %v1609_v45 = vsel %vm267_vm0, %v3750_v20, %v1608_v58 }
 0x22e   : > { %v1367_v42 = vrot.slane %v3985_v61, 4  ;;  %v3997_v53 = vperm.slane %v1930_v32, %v2934_v18  ;;  %v2182_v62 = vrot.slane %v3808_v30, 4  ;;  %v2130_v58 = vrot.slane %v3841_v16, 4 }
 0x22f   : > { %v2269_v35 = vpack.c.b16 %v2268_v56, %v2268_v56  ;;  %v1491_v28 = vpack.c.b16 %v1490_v19, %v1490_v19 }
 0x230   : > { %2507 = vrot.lane.b32.xlu1 %v2506_v39, %s2860_s25  ;;  %2230 = vrot.lane.b32.xlu2 %v2229_v29, %s2858_s23  ;;  %v1973_v39 = vpack.c.b16 %v1972_v5, %v1972_v5  ;;  %v3975_v29 = vperm.slane %v1956_v2, %v2934_v18  ;;  %v1368_v5 = vsel %vm267_vm0, 0, %v1367_v42  ;;  %v1941_v32 = vrot.slane %v3997_v53, 4 }
 0x231   : > { %1452 = vrot.lane.b32.xlu0 %v1451_v1, %s2857_s22  ;;  %v1712_v1 = vpack.c.b16 %v1711_v0, %v1711_v0  ;;  %v1455_v0 = vunpack.c.l.b16 %v1368_v5  ;;  %v2183_v33 = vsel %vm267_vm0, %v3788_v59, %v2182_v62  ;;  %v2131_v52 = vsel %vm267_vm0, %v3833_v43, %v2130_v58 }
 0x232   : > { %v2007_v48 = vunpack.c.l.b16 %v3975_v29  ;;  %v1942_v30 = vsel %vm267_vm0, 0, %v1941_v32  ;;  %v4034_v19 = vperm.slane %v2131_v52, %v2934_v18  ;;  %v1967_v43 = vrot.slane %v3975_v29, 4 }
 0x233   : > { %v1456_v37 = vpack.c.b16 %v1455_v0, %v1455_v0  ;;  %v4072_v58 = vperm.slane %v3658_v54, %v2934_v18  ;;  %v4088_v52 = vperm.slane %v3644_v9, %v2934_v18 }
 0x234   : > { %v2008_v31 = vpack.c.b16 %v2007_v48, %v2007_v48  ;;  %v1393_v48 = vrot.slane %v3888_v47, 4  ;;  %v1968_v29 = vsel %vm267_vm0, 0, %v1967_v43 }
 0x238   : > { %1487 = vrot.lane.b32.xlu1 %v1486_v22, %s2857_s22  ;;  %2542 = vrot.lane.b32.xlu2 %v2541_v3, %s2860_s25  ;;  %v4000_v22 = vperm.slane %v1609_v45, %v2934_v18  ;;  %v1890_v3 = vsel %vm267_vm0, 0, %v1889_v17  ;;  %v1879_v45 = vrot.slane %v3918_v12, 4 }
 0x239   : > { %1748 = vrot.lane.b32.xlu0 %v1747_v4, %s2861_s26  ;;  %v1660_v4 = vrot.slane %v3795_v51, 4  ;;  %v1977_v20 = vunpack.c.l.b16 %v1890_v3  ;;  %v2238_v3 = vunpack.c.l.b16 %v4034_v19 }
 0x23a   : > { %v1716_v2 = vunpack.c.l.b16 %v4000_v22  ;;  %v1620_v43 = vrot.slane %v4000_v22, 4 }
 0x23b   : > { %v1661_v51 = vsel %vm267_vm0, %v3782_v40, %v1660_v4  ;;  %v1978_v60 = vpack.c.b16 %v1977_v20, %v1977_v20  ;;  %v2012_v40 = vunpack.c.l.b16 %v1942_v30  ;;  %v1445_v4 = vrot.slane %v3930_v27, 4 }
 0x23c   : > { %v2239_v62 = vpack.c.b16 %v2238_v3, %v2238_v3  ;;  %v4055_v20 = vperm.slane %v3873_v50, %v2934_v18  ;;  %v1915_v27 = vrot.slane %v3954_v49, 4  ;;  %v1931_v50 = vrot.slane %v3933_v55, 4 }
 0x23d   : > { %v2013_v56 = vpack.c.b16 %v2012_v40, %v2012_v40  ;;  %v2142_v3 = vrot.slane %v4034_v19, 4 }
 0x23e   : > { %v1756_v0 = vunpack.c.l.b16 %v4055_v20  ;;  %v1932_v49 = vsel %vm267_vm0, %v3909_v14, %v1931_v50 }
 0x23f   : > { %v2143_v22 = vsel %vm267_vm0, 0, %v2142_v3  ;;  %v4123_v50 = vperm.slane %v1932_v49, %v2934_v18 }
 0x240   : > { %1974 = vrot.lane.b32.xlu1 %v1973_v39, %s2857_s22  ;;  %1713 = vrot.lane.b32.xlu2 %v1712_v1, %s2861_s26  ;;  %v1717_v39 = vpack.c.b16 %v1716_v2, %v1716_v2  ;;  %v4017_v1 = vperm.slane %v1661_v51, %v2934_v18  ;;  %v1446_v2 = vsel %vm267_vm0, 0, %v1445_v4  ;;  %v1757_v30 = vpack.c.b16 %v1756_v0, %v1756_v0 }
 0x241   : > { %2235 = vrot.lane.b32.xlu0 %v2234_v8, %s2861_s26  ;;  %v4021_v8 = vperm.slane %v2183_v33, %v2934_v18  ;;  %v1495_v51 = vunpack.c.l.b16 %v1446_v2  ;;  %v2248_v0 = vunpack.c.l.b16 %v2143_v22 }
 0x242   : > { %v1751_v59 = vunpack.c.l.b16 %v4017_v1  ;;  %v1672_v54 = vrot.slane %v4017_v1, 4 }
 0x243   : > { %v2273_v23 = vunpack.c.l.b16 %v4021_v8 }
 0x244   : > { %v1752_v17 = vpack.c.b16 %v1751_v59, %v1751_v59 }
 0x245   : > { %v2274_v42 = vpack.c.b16 %v2273_v23, %v2273_v23  ;;  %v1465_v23 = vunpack.c.l.b16 %v4072_v58 }
 0x248   : > { %2270 = vrot.lane.b32.xlu1 %v2269_v35, %s2861_s26  ;;  %2009 = vrot.lane.b32.xlu2 %v2008_v31, %s2857_s22  ;;  %v1394_v31 = vsel %vm267_vm0, 0, %v1393_v48  ;;  %v4040_v35 = vperm.slane %v3774_v7, %v2934_v18 }
 0x249   : > { %1492 = vrot.lane.b32.xlu0 %v1491_v28, %s2858_s23  ;;  %v1460_v47 = vunpack.c.l.b16 %v1394_v31  ;;  %v1880_v28 = vsel %vm267_vm0, %v3894_v38, %v1879_v45  ;;  %v2017_v38 = vunpack.c.l.b16 %v1968_v29  ;;  %v1466_v45 = vpack.c.b16 %v1465_v23, %v1465_v23 }
 0x24a   : > { %v4031_v16 = vpop.permute.xlu2 %2477  ;;  %v1721_v12 = vunpack.c.l.b16 %v4040_v35  ;;  %v1500_v31 = vunpack.c.l.b16 %v4088_v52 }
 0x24b   : > { %v1461_v5 = vpack.c.b16 %v1460_v47, %v1460_v47  ;;  %v2018_v33 = vpack.c.b16 %v2017_v38, %v2017_v38 }
 0x24c   : > { %v1722_v32 = vpack.c.b16 %v1721_v12, %v1721_v12  ;;  %v4109_v12 = vperm.slane %v1880_v28, %v2934_v18  ;;  %v1501_v4 = vpack.c.b16 %v1500_v31, %v1500_v31 }
 0x24e   : > { %v1987_v2 = vunpack.c.l.b16 %v4109_v12 }
 0x250   : > { %1718 = vrot.lane.b32.xlu1 %v1717_v39, %s2856_s21  ;;  %1457 = vrot.lane.b32.xlu2 %v1456_v37, %s2858_s23  ;;  %v1496_v39 = vpack.c.b16 %v1495_v51, %v1495_v51  ;;  %v4068_v37 = vperm.slane %v3878_v41, %v2934_v18  ;;  %v1988_v51 = vpack.c.b16 %v1987_v2, %v1987_v2 }
 0x251   : > { %1979 = vrot.lane.b32.xlu0 %v1978_v60, %s2858_s23  ;;  %v1916_v60 = vsel %vm267_vm0, 0, %v1915_v27  ;;  %v2194_v27 = vrot.slane %v4021_v8, 4  ;;  %v2022_v8 = vunpack.c.l.b16 %v4123_v50 }
 0x252   : > { %v1982_v55 = vunpack.c.l.b16 %v1916_v60  ;;  %v2243_v41 = vunpack.c.l.b16 %v4068_v37 }
 0x253   : > { %v4051_v7 = vpop.permute.xlu2 %2517 }
 0x254   : > { %v1983_v48 = vpack.c.b16 %v1982_v55, %v1982_v55  ;;  %v4129_v55 = vperm.slane %v3651_v46, %v2934_v18  ;;  %v1646_v46 = vrot.slane %v4040_v35, 4 }
 0x258   : > { %2014 = vrot.lane.b32.xlu1 %v2013_v56, %s2858_s23  ;;  %1753 = vrot.lane.b32.xlu2 %v1752_v17, %s2856_s21  ;;  %v2244_v56 = vpack.c.b16 %v2243_v41, %v2243_v41  ;;  %v4092_v17 = vperm.slane %v3882_v24, %v2934_v18 }
 0x259   : > { %2275 = vrot.lane.b32.xlu0 %v2274_v42, %s2856_s21  ;;  %v1673_v42 = vsel %vm267_vm0, 0, %v1672_v54 }
 0x25a   : > { %v2278_v24 = vunpack.c.l.b16 %v4092_v17  ;;  %v1761_v47 = vunpack.c.l.b16 %v1673_v42 }
 0x25b   : > { %v4074_v40 = vpop.permute.xlu2 %2492 }
 0x25c   : > { %v1762_v29 = vpack.c.b16 %v1761_v47, %v1761_v47  ;;  %v1647_v47 = vsel %vm267_vm0, 0, %v1646_v46 }
 0x260   : > { %1462 = vrot.lane.b32.xlu1 %v1461_v5, %s2861_s26  ;;  %2240 = vrot.lane.b32.xlu2 %v2239_v62, %s2856_s21  ;;  %v2279_v5 = vpack.c.b16 %v2278_v24, %v2278_v24  ;;  %v4149_v24 = vperm.slane %v3662_v57, %v2934_v18 }
 0x261   : > { %1723 = vrot.lane.b32.xlu0 %v1722_v32, %s2859_s24  ;;  %v1621_v32 = vsel %vm267_vm0, 0, %v1620_v43 }
 0x262   : > { %v1726_v38 = vunpack.c.l.b16 %v1621_v32 }
 0x263   : > { %v4094_v14 = vpop.permute.xlu1 %2482  ;;  %v4100_v1 = vpop.permute.xlu2 %2532 }
 0x264   : > { %v1727_v60 = vpack.c.b16 %v1726_v38, %v1726_v38  ;;  %v2220_v38 = vrot.slane %v4092_v17, 4  ;;  %v1369_v17 = vrot.slane %v4072_v58, 4 }
 0x268   : > { %1758 = vrot.lane.b32.xlu1 %v1757_v30, %s2859_s24  ;;  %1497 = vrot.lane.b32.xlu2 %v1496_v39, %s2861_s26  ;;  %v2249_v30 = vpack.c.b16 %v2248_v0, %v2248_v0  ;;  %v2195_v39 = vsel %vm267_vm0, 0, %v2194_v27 }
 0x269   : > { %2019 = vrot.lane.b32.xlu0 %v2018_v33, %s2861_s26  ;;  %v1905_v33 = vrot.slane %v3925_v44, 4  ;;  %v2283_v23 = vunpack.c.l.b16 %v2195_v39 }
 0x26a   : > { %v4081_v59 = vpop.permute.xlu0 %2512 }
 0x26b   : > { %v1906_v54 = vsel %vm267_vm0, %v3900_v21, %v1905_v33  ;;  %v2284_v31 = vpack.c.b16 %v2283_v23, %v2283_v23  ;;  %v2168_v23 = vrot.slane %v4068_v37, 4  ;;  %v2546_v37 = vsel %vm431_vm1, %v3680_v36, %v4031_v16 }
 0x26c   : > { %v4145_v42 = vperm.slane %v1906_v54, %v2934_v18  ;;  %v2561_v54 = vsel %vm431_vm1, %v3697_v25, %v4081_v59  ;;  %v1421_v25 = vrot.slane %v4088_v52, 4 }
 0x26d   : > { %v4111_v62 = vpop.permute.xlu1 %2522 }
 0x26e   : > { %v1992_v21 = vunpack.c.l.b16 %v4145_v42 }
 0x270   : > { %2245 = vrot.lane.b32.xlu1 %v2244_v56, %s2859_s24  ;;  %1984 = vrot.lane.b32.xlu2 %v1983_v48, %s2861_s26  ;;  %v1505_v48 = vunpack.c.l.b16 %v4129_v55  ;;  %v2023_v56 = vpack.c.b16 %v2022_v8, %v2022_v8 }
 0x271   : > { %1467 = vrot.lane.b32.xlu0 %v1466_v45, %s2856_s21  ;;  %v1957_v45 = vrot.slane %v3958_v6, 4 }
 0x272   : > { %v4102_v9 = vpop.permute.xlu0 %2487  ;;  %v1506_v43 = vpack.c.b16 %v1505_v48, %v1505_v48 }
 0x273   : > { %v1958_v6 = vsel %vm267_vm0, %v3944_v63, %v1957_v45  ;;  %v1993_v63 = vpack.c.b16 %v1992_v21, %v1992_v21  ;;  %v1370_v45 = vsel %vm267_vm0, 0, %v1369_v17 }
 0x274   : > { %v4166_v22 = vperm.slane %v1958_v6, %v2934_v18  ;;  %v1475_v59 = vunpack.c.l.b16 %v1370_v45 }
 0x275   : > { %v4134_v41 = vpop.permute.xlu1 %2497 }
 0x278   : > { %1502 = vrot.lane.b32.xlu1 %v1501_v4, %s2856_s21  ;;  %2280 = vrot.lane.b32.xlu2 %v2279_v5, %s2859_s24  ;;  %v1731_v4 = vunpack.c.l.b16 %v1647_v47  ;;  %v1470_v5 = vunpack.c.l.b16 %v4149_v24 }
 0x279   : > { %1763 = vrot.lane.b32.xlu0 %v1762_v29, %s2862_s27  ;;  %v1698_v29 = vrot.slane %v4055_v20, 4  ;;  %v2027_v20 = vunpack.c.l.b16 %v4166_v22 }
 0x27a   : > { %v2226_v19 = vpop.permute.xlu2 %2225  ;;  %v4119_v28 = vpop.permute.xlu0 %2527  ;;  %v1732_v27 = vpack.c.b16 %v1731_v4, %v1731_v4  ;;  %v1471_v0 = vpack.c.b16 %v1470_v5, %v1470_v5  ;;  %v1476_v5 = vpack.c.b16 %v1475_v59, %v1475_v59 }
 0x27b   : > { %v2294_v35 = vsel %vm431_vm1, %v3864_v10, %v2226_v19  ;;  %v1699_v10 = vsel %vm267_vm0, 0, %v1698_v29  ;;  %v2221_v19 = vsel %vm267_vm0, 0, %v2220_v38  ;;  %v2028_v48 = vpack.c.b16 %v2027_v20, %v2027_v20 }
 0x27c   : > { %v1766_v33 = vunpack.c.l.b16 %v1699_v10  ;;  %v2288_v8 = vunpack.c.l.b16 %v2221_v19  ;;  %v1422_v38 = vsel %vm267_vm0, 0, %v1421_v25 }
 0x27d   : > { %v1510_v20 = vunpack.c.l.b16 %v1422_v38 }
 0x280   : > { %1989 = vrot.lane.b32.xlu1 %v1988_v51, %s2856_s21  ;;  %1728 = vrot.lane.b32.xlu2 %v1727_v60, %s2862_s27  ;;  %v1891_v60 = vrot.slane %v4109_v12, 4  ;;  %v2563_v12 = vsel %vm435_vm2, %v2561_v54, %v4051_v7  ;;  %v2548_v7 = vsel %vm435_vm2, %v2546_v37, %v4094_v14 }
 0x281   : > { %2250 = vrot.lane.b32.xlu0 %v2249_v30, %s2862_s27  ;;  %v2565_v47 = vsel %vm438_vm3, %v2563_v12, %v4111_v62  ;;  %v2550_v36 = vsel %vm438_vm3, %v2548_v7, %v4102_v9 }
 0x282   : > { %v4137_v49 = vpop.permute.xlu2 %2537  ;;  %v1704_v44 = vpop.permute.xlu0 %1703  ;;  %v1892_v58 = vsel %vm267_vm0, 0, %v1891_v60  ;;  %v2567_v62 = vsel %vm441_vm4, %v2565_v47, %v4119_v28  ;;  %v1395_v60 = vrot.slane %v4149_v24, 4  ;;  %v1969_v24 = vrot.slane %v4166_v22, 4 }
 0x283   : > { %v1772_v30 = vsel %vm431_vm1, %v3802_v13, %v1704_v44  ;;  %v2289_v13 = vpack.c.b16 %v2288_v8, %v2288_v8  ;;  %v2169_v44 = vsel %vm267_vm0, 0, %v2168_v23  ;;  %v1511_v23 = vpack.c.b16 %v1510_v20, %v1510_v20 }
 0x284   : > { %v1970_v25 = vsel %vm267_vm0, 0, %v1969_v24 }
 0x288   : > { %2285 = vrot.lane.b32.xlu1 %v2284_v31, %s2862_s27  ;;  %2024 = vrot.lane.b32.xlu2 %v2023_v56, %s2856_s21  ;;  %v1767_v56 = vpack.c.b16 %v1766_v33, %v1766_v33  ;;  %v1997_v31 = vunpack.c.l.b16 %v1892_v58 }
 0x289   : > { %1507 = vrot.lane.b32.xlu0 %v1506_v43, %s2859_s24  ;;  %v1943_v43 = vrot.slane %v4123_v50, 4 }
 0x28a   : > { %v1739_v3 = vpop.permute.xlu1 %1738  ;;  %v2231_v57 = vpop.permute.xlu2 %2230  ;;  %v1998_v4 = vpack.c.b16 %v1997_v31, %v1997_v31 }
 0x28b   : > { %v4163_v32 = vsel %vm435_vm2, %v2294_v35, %v2231_v57  ;;  %v2261_v2 = vpop.permute.xlu0 %2260  ;;  %v1787_v21 = vsel %vm431_vm1, %v3838_v26, %v1739_v3  ;;  %v2253_v35 = vunpack.c.l.b16 %v2169_v44  ;;  %v1447_v3 = vrot.slane %v4129_v55, 4 }
 0x28c   : > { %v2309_v16 = vsel %vm431_vm1, %v3846_v15, %v2261_v2  ;;  %v1944_v9 = vsel %vm267_vm0, 0, %v1943_v43  ;;  %v2552_v15 = vsel %vm441_vm4, %v2550_v36, %v4074_v40  ;;  %v2569_v2 = vsel %vm444_vm5, %v2567_v62, %v4100_v1 }
 0x28d   : > { %v2254_v29 = vpack.c.b16 %v2253_v35, %v2253_v35  ;;  %v2571_v28 = vsel %vm447_vm6, %v2569_v2, %v4137_v49  ;;  %v2032_v55 = vunpack.c.l.b16 %v1944_v9  ;;  %v2554_v40 = vsel %vm444_vm5, %v2552_v15, %v4134_v41 }
 0x28e   : > { %v1917_v1 = vrot.slane %v4145_v42, 4  ;;  %v1396_v42 = vsel %vm267_vm0, 0, %v1395_v60 }
 0x28f   : > { %v2033_v41 = vpack.c.b16 %v2032_v55, %v2032_v55  ;;  %v1480_v45 = vunpack.c.l.b16 %v1396_v42 }
 0x290   : > { %1733 = vrot.lane.b32.xlu1 %v1732_v27, %s2860_s25  ;;  %1472 = vrot.lane.b32.xlu2 %v1471_v0, %s2859_s24 }
 0x291   : > { %1994 = vrot.lane.b32.xlu0 %v1993_v63, %s2859_s24  ;;  %v1448_v63 = vsel %vm267_vm0, 0, %v1447_v3  ;;  %v1481_v37 = vpack.c.b16 %v1480_v45, %v1480_v45 }
 0x292   : > { %v2503_v51 = vpop.permute.xlu1 %2502  ;;  %v2543_v18 = vpop.permute.xlu2 %2542  ;;  %v1515_v17 = vunpack.c.l.b16 %v1448_v63 }
 0x293   : > { %v1709_v39 = vpop.permute.xlu0 %1708  ;;  %v2573_v27 = vsel %vm450_vm7, %v2571_v28, %v2543_v18  ;;  %v2556_v0 = vsel %vm447_vm6, %v2554_v40, %v2503_v51  ;;  %v1918_v18 = vsel %vm267_vm0, 0, %v1917_v1  ;;  %vm2654_vm0 = vcmask 7168  }
 0x294   : > { %v1774_v46 = vsel %vm435_vm2, %v1772_v30, %v1709_v39  ;;  %v2577_v30 = vunpack.c.l.b16 %v2573_v27  ;;  %v1516_v54 = vpack.c.b16 %v1515_v17, %v1515_v17  ;;  %v2002_v51 = vunpack.c.l.b16 %v1918_v18 }
 0x296   : > { %v2003_v44 = vpack.c.b16 %v2002_v51, %v2002_v51 }
 0x298   : > { %2029 = vrot.lane.b32.xlu1 %v2028_v48, %s2859_s24  ;;  %1768 = vrot.lane.b32.xlu2 %v1767_v56, %s2860_s25 }
 0x299   : > { %2290 = vrot.lane.b32.xlu0 %v2289_v13, %s2860_s25 }
 0x29a   : > { %v1744_v52 = vpop.permute.xlu1 %1743  ;;  %v1714_v6 = vpop.permute.xlu2 %1713 }
 0x29b   : > { %v1789_v50 = vsel %vm435_vm2, %v1787_v21, %v1744_v52  ;;  %v4209_v57 = vsel %vm438_vm3, %v1774_v46, %v1714_v6  ;;  %v2266_v14 = vpop.permute.xlu0 %2265 }
 0x29c   : > { %v4214_v26 = vsel %vm435_vm2, %v2309_v16, %v2266_v14 }
 0x2a0   : > { %1477 = vrot.lane.b32.xlu1 %v1476_v5, %s2862_s27  ;;  %2255 = vrot.lane.b32.xlu2 %v2254_v29, %s2860_s25 }
 0x2a1   : > { %1999 = vrot.lane.b32.xlu0 %v1998_v4, %s2862_s27 }
 0x2a2   : > { %v2508_v10 = vpop.permute.xlu1 %2507  ;;  %v2010_v49 = vpop.permute.xlu2 %2009 }
 0x2a3   : > { %v2558_v19 = vsel %vm450_vm7, %v2556_v0, %v2508_v10  ;;  %v1453_v33 = vpop.permute.xlu0 %1452 }
 0x2a4   : > { %v2576_v39 = vunpack.c.l.b16 %v2558_v19  ;;  %v1521_v46 = vsel %vm431_vm1, %v3985_v61, %v1453_v33  ;;  %v2037_v61 = vunpack.c.l.b16 %v1970_v25 }
 0x2a6   : > { %v2578_v8 = vpack.c.b16 %v2577_v30, %v2576_v39  ;;  %v2038_v16 = vpack.c.b16 %v2037_v61, %v2037_v61 }
 0x2a8   : > { %2580 = vst [vmem:[#allocation2 + $0x20] sm:$0x33] %v2578_v8  ;;  %2034 = vrot.lane.b32.xlu1 %v2033_v41, %s2862_s27  ;;  %1512 = vrot.lane.b32.xlu2 %v1511_v23, %s2862_s27 }
 0x2a9   : > { %1517 = vrot.lane.b32.xlu0 %v1516_v54, %s2860_s25 }
 0x2aa   : > { %v1488_v48 = vpop.permute.xlu1 %1487  ;;  %v1458_v56 = vpop.permute.xlu2 %1457 }
 0x2ab   : > { %v1523_v58 = vsel %vm435_vm2, %v1521_v46, %v1458_v56  ;;  %v1749_v12 = vpop.permute.xlu0 %1748  ;;  %v1536_v62 = vsel %vm431_vm1, %v3968_v11, %v1488_v48  ;;  %v2058_v11 = vsel %vm431_vm1, %v3997_v53, %v2010_v49 }
 0x2ac   : > { %v1791_v13 = vsel %vm438_vm3, %v1789_v50, %v1749_v12 }
 0x2af   : > { %v2586_v59 = vld [vmem:[#allocation2 + $0x20] sm:$0x33] }
 0x2b0   : > { %2004 = vrot.lane.b32.xlu1 %v2003_v44, %s2860_s25  ;;  %1482 = vrot.lane.b32.xlu2 %v1481_v37, %s2860_s25  ;;  %v2600_v22 = vunpack.c.l.b16 %v2586_v59  ;;  %v2601_v31 = vunpack.c.h.b16 %v2586_v59 }
 0x2b2   : > { %v1975_v43 = vpop.permute.xlu1 %1974  ;;  %v1754_v7 = vpop.permute.xlu2 %1753  ;;  %v2606_v47 = vpack.c.b16 %v2600_v22, %v2600_v22  ;;  %v2607_v21 = vpack.c.b16 %v2601_v31, %v2601_v31 }
 0x2b3   : > { %v2236_v52 = vpop.permute.xlu0 %2235  ;;  %v2043_v5 = vsel %vm431_vm1, %v3979_v34, %v1975_v43  ;;  %v1793_v42 = vsel %vm441_vm4, %v1791_v13, %v1754_v7 }
 0x2b4   : > { %v2298_v6 = vsel %vm438_vm3, %v4163_v32, %v2236_v52  ;;  %v2618_v35 = vsel %vm2616_vm14, %v2606_v47, 0  ;;  %v2621_v36 = vsel %vm2616_vm14, %v2607_v21, 0 }
 0x2b5   : > { %2628 = vmatpush.bf16.msra.mxu0 %v2618_v35  ;;  %2641 = vmatpush.bf16.msra.mxu1 %v2621_v36 }
 0x2b8   : > { %2039 = vrot.lane.b32.xlu2 %v2038_v16, %s2860_s25 }
 0x2ba   : > { %v2271_v50 = vpop.permute.xlu1 %2270  ;;  %v2241_v14 = vpop.permute.xlu2 %2240 }
 0x2bb   : > { %v2313_v3 = vsel %vm438_vm3, %v4214_v26, %v2271_v50  ;;  %v1493_v4 = vpop.permute.xlu0 %1492  ;;  %v2300_v22 = vsel %vm441_vm4, %v2298_v6, %v2241_v14 }
 0x2bc   : > { %v1538_v9 = vsel %vm435_vm2, %v1536_v62, %v1493_v4 }
 0x2c2   : > { %v1719_v15 = vpop.permute.xlu1 %1718  ;;  %v1498_v32 = vpop.permute.xlu2 %1497 }
 0x2c3   : > { %v4260_v29 = vsel %vm438_vm3, %v1538_v9, %v1498_v32  ;;  %v1980_v2 = vpop.permute.xlu0 %1979  ;;  %v1778_v24 = vsel %vm441_vm4, %v4209_v57, %v1719_v15 }
 0x2c4   : > { %v2045_v38 = vsel %vm435_vm2, %v2043_v5, %v1980_v2 }
 0x2ca   : > { %v2015_v28 = vpop.permute.xlu1 %2014  ;;  %v1985_v55 = vpop.permute.xlu2 %1984 }
 0x2cb   : > { %v2060_v26 = vsel %vm435_vm2, %v2058_v11, %v2015_v28  ;;  %v4267_v63 = vsel %vm438_vm3, %v2045_v38, %v1985_v55  ;;  %v2276_v40 = vpop.permute.xlu0 %2275 }
 0x2cc   : > { %v2315_v61 = vsel %vm441_vm4, %v2313_v3, %v2276_v40 }
 0x2d2   : > { %v1463_v27 = vpop.permute.xlu1 %1462  ;;  %v2281_v1 = vpop.permute.xlu2 %2280 }
 0x2d3   : > { %v1525_v34 = vsel %vm438_vm3, %v1523_v58, %v1463_v27  ;;  %v1724_v0 = vpop.permute.xlu0 %1723  ;;  %v2317_v7 = vsel %vm444_vm5, %v2315_v61, %v2281_v1 }
 0x2d4   : > { %v1780_v48 = vsel %vm444_vm5, %v1778_v24, %v1724_v0  ;;  %v2797_v24 = vld [vmem:[#allocation2 + $0x8] sm:$0xf0] }
 0x2da   : > { %v1759_v10 = vpop.permute.xlu1 %1758  ;;  %v1729_v20 = vpop.permute.xlu2 %1728 }
 0x2db   : > { %v2020_v19 = vpop.permute.xlu0 %2019  ;;  %v1795_v51 = vsel %vm444_vm5, %v1793_v42, %v1759_v10  ;;  %v1782_v45 = vsel %vm447_vm6, %v1780_v48, %v1729_v20  ;;  %v2814_v48 = vld [vmem:[#allocation2 + $0x4] sm:$0xf] }
 0x2dc   : > { %v2062_v33 = vsel %vm438_vm3, %v2060_v26, %v2020_v19 }
 0x2e2   : > { %v2246_v17 = vpop.permute.xlu1 %2245  ;;  %v2025_v49 = vpop.permute.xlu2 %2024 }
 0x2e3   : > { %v1468_v53 = vpop.permute.xlu0 %1467  ;;  %v2302_v57 = vsel %vm444_vm5, %v2300_v22, %v2246_v17  ;;  %v2064_v40 = vsel %vm441_vm4, %v2062_v33, %v2025_v49 }
 0x2e4   : > { %v1527_v9 = vsel %vm441_vm4, %v1525_v34, %v1468_v53 }
 0x2ea   : > { %v1503_v60 = vpop.permute.xlu1 %1502  ;;  %v1473_v39 = vpop.permute.xlu2 %1472 }
 0x2eb   : > { %v1764_v30 = vpop.permute.xlu0 %1763  ;;  %v1529_v15 = vsel %vm444_vm5, %v1527_v9, %v1473_v39  ;;  %v1542_v2 = vsel %vm441_vm4, %v4260_v29, %v1503_v60 }
 0x2ec   : > { %v1797_v46 = vsel %vm447_vm6, %v1795_v51, %v1764_v30 }
 0x2f2   : > { %v1990_v41 = vpop.permute.xlu1 %1989  ;;  %v1769_v8 = vpop.permute.xlu2 %1768 }
 0x2f3   : > { %v2251_v18 = vpop.permute.xlu0 %2250  ;;  %v1799_v56 = vsel %vm450_vm7, %v1797_v46, %v1769_v8  ;;  %v2049_v19 = vsel %vm441_vm4, %v4267_v63, %v1990_v41  ;;  %v2815_v41 = vld [vmem:[#allocation2 + $0x4] sm:$0xf0]  ;;  %v2795_v46 = vld [vmem:[#allocation2] sm:$0xf] }
 0x2f4   : > { %v1803_v37 = vunpack.c.l.b16 %v1799_v56  ;;  %v2304_v43 = vsel %vm447_vm6, %v2302_v57, %v2251_v18  ;;  %v2796_v56 = vor.u32 %v2815_v41, %v2795_v46 }
 0x2fa   : > { %v2286_v23 = vpop.permute.xlu1 %2285  ;;  %v2256_v58 = vpop.permute.xlu2 %2255 }
 0x2fb   : > { %v1508_v54 = vpop.permute.xlu0 %1507  ;;  %v2306_v47 = vsel %vm450_vm7, %v2304_v43, %v2256_v58  ;;  %v2319_v52 = vsel %vm447_vm6, %v2317_v7, %v2286_v23  ;;  %v2581_v58 = vld [vmem:[%s4323_s1] sm:$0xf] }
 0x2fc   : > { %v2324_v6 = vunpack.c.l.b16 %v2306_v47  ;;  %v1544_v38 = vsel %vm444_vm5, %v1542_v2, %v1508_v54 }
 0x302   : > { %v1734_v12 = vpop.permute.xlu1 %1733  ;;  %v1513_v36 = vpop.permute.xlu2 %1512 }
 0x303   : > { %v1784_v44 = vsel %vm450_vm7, %v1782_v45, %v1734_v12  ;;  %v1995_v25 = vpop.permute.xlu0 %1994  ;;  %v1546_v55 = vsel %vm447_vm6, %v1544_v38, %v1513_v36  ;;  %v2800_v45 = vor.u32 %v2814_v48, %v2797_v24 }
 0x304   : > { %v1802_v13 = vunpack.c.l.b16 %v1784_v44  ;;  %v2051_v17 = vsel %vm444_vm5, %v2049_v19, %v1995_v25 }
 0x306   : > { %v1804_v59 = vpack.c.b16 %v1803_v37, %v1802_v13 }
 0x308   : > { %v1805_v31 = vrot.slane %v1804_v59, 6 }
 0x30a   : > { %1807 = vst [vmem:[#allocation2 + $0x10] sm:$0xcc] %v1805_v31  ;;  %v2030_v21 = vpop.permute.xlu1 %2029  ;;  %v1483_v32 = vpop.permute.xlu2 %1482 }
 0x30b   : > { %v2291_v35 = vpop.permute.xlu0 %2290  ;;  %v2066_v1 = vsel %vm444_vm5, %v2064_v40, %v2030_v21 }
 0x30c   : > { %v2321_v16 = vsel %vm450_vm7, %v2319_v52, %v2291_v35 }
 0x30d   : > { %v2325_v50 = vunpack.c.l.b16 %v2321_v16 }
 0x30f   : > { %v2326_v14 = vpack.c.b16 %v2325_v50, %v2324_v6 }
 0x311   : > { %v2327_v62 = vrot.slane %v2326_v14, 6 }
 0x312   : > { %v1478_v4 = vpop.permute.xlu1 %1477  ;;  %v2040_v20 = vpop.permute.xlu2 %2039 }
 0x313   : > { %2329 = vst [vmem:[#allocation2 + $0x18] sm:$0xcc] %v2327_v62  ;;  %v2000_v3 = vpop.permute.xlu0 %1999  ;;  %v1531_v5 = vsel %vm447_vm6, %v1529_v15, %v1478_v4 }
 0x314   : > { %v1533_v11 = vsel %vm450_vm7, %v1531_v5, %v1483_v32  ;;  %v2053_v33 = vsel %vm447_vm6, %v2051_v17, %v2000_v3 }
 0x315   : > { %v1551_v34 = vunpack.c.l.b16 %v1533_v11 }
 0x31a   : > { %v2035_v28 = vpop.permute.xlu1 %2034 }
 0x31b   : > { %v1518_v26 = vpop.permute.xlu0 %1517  ;;  %v2068_v10 = vsel %vm447_vm6, %v2066_v1, %v2035_v28 }
 0x31c   : > { %v1548_v27 = vsel %vm450_vm7, %v1546_v55, %v1518_v26  ;;  %v2070_v53 = vsel %vm450_vm7, %v2068_v10, %v2040_v20 }
 0x31d   : > { %v1552_v0 = vunpack.c.l.b16 %v1548_v27  ;;  %v2074_v30 = vunpack.c.l.b16 %v2070_v53 }
 0x31f   : > { %v1553_v29 = vpack.c.b16 %v1552_v0, %v1551_v34 }
 0x321   : > { %1555 = vst [vmem:[#allocation2 + $0x10] sm:$0x33] %v1553_v29 }
 0x322   : > { %v2005_v49 = vpop.permute.xlu1 %2004 }
 0x323   : > { %v2055_v60 = vsel %vm450_vm7, %v2053_v33, %v2005_v49 }
 0x324   : > { %v2073_v39 = vunpack.c.l.b16 %v2055_v60 }
 0x326   : > { %v2075_v18 = vpack.c.b16 %v2074_v30, %v2073_v39 }
 0x328   : > { %2077 = vst [vmem:[#allocation2 + $0x18] sm:$0x33] %v2075_v18  ;;  %v2803_v8 = vld [vmem:[#allocation2 + $0x10] sm:$0xf]  ;;  %v2816_v54 = vld [vmem:[#allocation2 + $0x14] sm:$0xf] }
 0x32f   : > { %v2817_v23 = vld [vmem:[#allocation2 + $0x14] sm:$0xf0]  ;;  %v2805_v42 = vld [vmem:[#allocation2 + $0x18] sm:$0xf0] }
 0x330   : > { %v2804_v51 = vor.u32 %v2817_v23, %v2803_v8  ;;  %v2808_v63 = vor.u32 %v2816_v54, %v2805_v42 }
 0x332   : > { %2629 = vmatpush.bf16.msra.mxu0 %v2804_v51  ;;  %2642 = vmatpush.bf16.msra.mxu1 %v2808_v63 }
 0x336   : > { %2630 = vmatpush.bf16.msra.mxu0 %v2796_v56  ;;  %2643 = vmatpush.bf16.msra.mxu1 %v2800_v45 }
 0x339   : > { %2809 = vmatmul.msk.bf16.vlgmr.msra.gmra.mxu0 %vm2612_vm15, %v2581_v58  ;;  %2810 = vmatmul.msk.bf16.vlgmr.msra.gmra.mxu1 %vm2612_vm15, %v2581_v58 }
 0x3b6   : > { %v2632_v12 = vpop.f32.mrf.mxu0  ;;  %v2645_v44 = vpop.f32.mrf.mxu1 }
 0x3b7   : > { %v2656_v25 = vmul.f32 %v2632_v12, %v2632_v12  ;;  %v2649_v37 = vpack.c.bf16 %v2645_v44, %v2632_v12  ;;  %v2651_v13 = vadd.f32 %v2645_v44, %v2632_v12  ;;  %v2657_v59 = vmul.f32 %v2645_v44, %v2645_v44 }
 0x3b9   : > { %2650 = vst [vmem:[%s210_s9] sm:$0xff] %v2649_v37  ;;  %2652 = vadd.xlane.f32.xlu0 %v2651_v13  ;;  %v2658_v22 = vadd.f32 %v2657_v59, %v2656_v25 }
 0x3bb   : > { %2659 = vadd.xlane.f32.xlu1 %v2658_v22 }
 0x3be   : > { %v2634_v57 = vpop.f32.mrf.mxu0  ;;  %v2647_v31 = vpop.f32.mrf.mxu1 }
 0x42c   : > { %v2653_v61 = vpop.xlane.xlu0 %2652 }
 0x42d   : > { %2655 = vst.msk [vmem:[%s214_s12] sm:$0xff] %vm2654_vm0, %v2653_v61 }
 0x42e   : > { %v2660_v43 = vpop.xlane.xlu1 %2659 }
 0x42f   : > { %2661 = vst.msk [vmem:[%s218_s16] sm:$0xff] %vm2654_vm0, %v2660_v43 }
 0x430 PF: > { %s15_s15 = sadd.s32 1, %s2852_s15  }
 0x431   : > { %p12_p4 = scmp.ge.s32.totalorder %s15_s15, 4  }
 0x433   :  { %14 = sbr.rel (!%p12_p4) target bundleno = 1 (0x1), region = 82 }

</bundles_post_ra>
